<compile_context>
chip_gen: v5e
topology: v5e:2x2
jax: 0.10.0
libtpu: 0.0.40
codegen_flags: <defaults>
</compile_context>

<pallas_src>
import jax
import jax.numpy as jnp
from jax import lax
from jax.experimental import pallas as pl
from jax.experimental.pallas import tpu as pltpu

# Model hyper-parameters (from the PyTorch script)
HIDDEN_SIZE = 32
INPUT_SIZE = 9
NUM_LAYERS = 2          # fixed to 2 in this implementation (matches module)
OUTPUT_SIZE = 7
C1 = 16                 # conv1 out channels
C2 = 32                 # conv2 out channels

# Example (small) shapes
BATCH = 2
SEQ_LEN = 8

# Tile-aligned (padded) sizes
LANE = 128
BP = 8                  # batch padded to one sublane tile
DP = LANE               # input features padded (lane INPUT_SIZE carries 1.0)
GW = 4 * HIDDEN_SIZE    # packed gate width = 128 (gate g at lanes [g*32,(g+1)*32))
CKP = LANE              # conv2 / FC contraction dim padded to 128 lanes
OUTP = LANE             # fc output padded (lane-dense output tile)


def lstm_cnn_kernel(x_ref,        # (T*BP, DP)   time-major, constant-1 lane at col D
                    wih0_ref,     # (DP, GW)     layer-0 input proj, bias folded at row D
                    wf_ref,       # (2H, 2GW)    [Whh0^T | Wih1^T ; 0 | Whh1^T]
                    wcf_ref,      # (3H + 3*CKP, GW)  conv1 taps, conv2 taps {0,1}, fc
                    bias_ref,     # (BP, GW)     rows: b1 | cb1 | cb2 | fcb | 0...
                    out_ref,      # (BP, OUTP)
                    xp_ref):      # (T*BP, GW)   VMEM scratch for hoisted projection
    f32 = jnp.float32
    H = HIDDEN_SIZE
    Bp = out_ref.shape[0]
    T = x_ref.shape[0] // Bp

    # Hoisted layer-0 input projection for all timesteps.  The layer-0 bias is
    # folded in via the constant-1 lane of x / row INPUT_SIZE of wih0.  Parked
    # in VMEM scratch so it does not occupy vregs across the unrolled loop.
    xp_ref[...] = jnp.dot(x_ref[...], wih0_ref[...], preferred_element_type=f32)

    # Recurrent weights (packed gates: N = 128 lanes for both layers).
    wf0 = wf_ref[0:H, :]            # h0_{t-1} -> [layer0 gates | layer1 input gates]
    whh1 = wf_ref[H:2 * H, GW:]     # h1_{t-2} -> layer1 recurrent gates
    b1b = jnp.broadcast_to(bias_ref[0:1, :], (Bp, GW))   # hoisted broadcast

    def cell(g, c):
        # One sigmoid + one tanh over the whole packed gate vreg, then cheap
        # 32-lane intra-vreg slices (i|f|g|o at 32-lane offsets).
        sg = jax.nn.sigmoid(g)
        tg = jnp.tanh(g)
        c_new = sg[:, H:2 * H] * c + sg[:, 0:H] * tg[:, 2 * H:3 * H]
        h_new = sg[:, 3 * H:] * jnp.tanh(c_new)
        return h_new, c_new

    zero_h = jnp.zeros((Bp, H), f32)
    c0, h1, c1 = zero_h, zero_h, zero_h

    # Wavefront step s=0: layer0 at t=0 (all recurrent inputs are zero).
    h0, c0 = cell(xp_ref[0:Bp, :], c0)

    h1_tail = {}
    # Steady wavefront steps s=1..T-1: layer0(t=s) and layer1(t=s-1).  Both
    # gate sets come from the single h0_{s-1}-driven matmul; the h1_{s-2} dot
    # accumulates into the layer-1 half.  The two dots are independent, so the
    # serial chain per step is one MXU round trip (statically unrolled, T=8).
    for s in range(1, T):
        f0 = jnp.dot(h0, wf0, preferred_element_type=f32)              # (Bp, 2*GW)
        g1 = f0[:, GW:] + jnp.dot(h1, whh1, preferred_element_type=f32) + b1b
        h1, c1 = cell(g1, c1)                                          # h1_{s-1}
        g0 = xp_ref[s * Bp:(s + 1) * Bp, :] + f0[:, :GW]
        h0, c0 = cell(g0, c0)                                          # h0_s
        if s - 1 >= T - 3:
            h1_tail[s - 1] = h1

    # Final wavefront step s=T: layer1 at t=T-1 only.
    g1 = (jnp.dot(h0, wf_ref[0:H, GW:], preferred_element_type=f32)
          + jnp.dot(h1, whh1, preferred_element_type=f32) + b1b)
    h1, _ = cell(g1, c1)
    h1_tail[T - 1] = h1

    # Conv stack only where it feeds the FC output (last timestep):
    #   conv2(T-1) needs conv1 at {T-2, T-1} (position T is the zero pad);
    #   conv1 there needs h1 at {T-3, T-2, T-1}.
    # Each conv is realized as accumulating per-tap matmuls (no im2col concat).
    cw1_0 = wcf_ref[0 * H:1 * H, :]
    cw1_1 = wcf_ref[1 * H:2 * H, :]
    cw1_2 = wcf_ref[2 * H:3 * H, :]
    cb1 = bias_ref[1:2, :]
    y1_a = jnp.maximum(                         # conv1 at t = T-2
        jnp.dot(h1_tail[T - 3], cw1_0, preferred_element_type=f32)
        + jnp.dot(h1_tail[T - 2], cw1_1, preferred_element_type=f32)
        + jnp.dot(h1_tail[T - 1], cw1_2, preferred_element_type=f32)
        + cb1, 0.0)
    y1_b = jnp.maximum(                         # conv1 at t = T-1 (right tap = pad)
        jnp.dot(h1_tail[T - 2], cw1_0, preferred_element_type=f32)
        + jnp.dot(h1_tail[T - 1], cw1_1, preferred_element_type=f32)
        + cb1, 0.0)

    off = 3 * H
    cw2_0 = wcf_ref[off:off + CKP, :]
    cw2_1 = wcf_ref[off + CKP:off + 2 * CKP, :]
    cb2 = bias_ref[2:3, :]
    y2 = jnp.maximum(                           # conv2 at t = T-1 (right tap = pad)
        jnp.dot(y1_a, cw2_0, preferred_element_type=f32)
        + jnp.dot(y1_b, cw2_1, preferred_element_type=f32)
        + cb2, 0.0)

    fcw = wcf_ref[off + 2 * CKP:off + 3 * CKP, :]
    out_ref[...] = (jnp.dot(y2, fcw, preferred_element_type=f32)
                    + bias_ref[3:4, :])


# ---------------- wrapper-side parameter packing (PyTorch layout in) ----------
# With H=32 the packed-gate weight is exactly W_pt.T (gate g lands at lanes
# [g*32,(g+1)*32)), and the packed bias is the PyTorch bias vector unchanged.

def _pack_weights_and_biases(p):
    H, D = HIDDEN_SIZE, INPUT_SIZE
    f32 = jnp.float32

    # Layer-0 input projection, bias folded into the constant-1 lane (row D).
    wih0 = jnp.zeros((DP, GW), f32)
    wih0 = wih0.at[:D, :].set(p["w_ih0"].T.astype(f32))
    wih0 = wih0.at[D, :].set((p["b_ih0"] + p["b_hh0"]).astype(f32))

    # Fused recurrent / cross-layer block:
    #   rows 0:H  (h0_{t-1}) -> [ W_hh0^T | W_ih1^T ]
    #   rows H:2H (h1_{t-2}) -> [    0    | W_hh1^T ]
    wf = jnp.zeros((2 * H, 2 * GW), f32)
    wf = wf.at[:H, :GW].set(p["w_hh0"].T.astype(f32))
    wf = wf.at[:H, GW:].set(p["w_ih1"].T.astype(f32))
    wf = wf.at[H:, GW:].set(p["w_hh1"].T.astype(f32))

    # Conv / FC weight stack (all 128 lanes wide):
    #   rows [k*H, (k+1)*H)              conv1 tap k  (H x C1 padded)
    #   rows [3H + k*CKP, 3H+(k+1)*CKP)  conv2 tap k in {0,1} (C1 x C2 padded)
    #   rows [3H + 2*CKP, 3H + 3*CKP)    fc (C2 x OUTPUT_SIZE padded)
    wcf = jnp.zeros((3 * H + 3 * CKP, GW), f32)
    for k in range(3):
        wcf = wcf.at[k * H:k * H + H, :C1].set(p["cw1"][:, :, k].T.astype(f32))
    for k in range(2):
        r = 3 * H + k * CKP
        wcf = wcf.at[r:r + C1, :C2].set(p["cw2"][:, :, k].T.astype(f32))
    r = 3 * H + 2 * CKP
    wcf = wcf.at[r:r + C2, :OUTPUT_SIZE].set(p["fcw"].T.astype(f32))

    # All remaining biases packed into one (8,128) buffer (one DMA).
    biases = jnp.zeros((BP, GW), f32)
    biases = biases.at[0, :].set((p["b_ih1"] + p["b_hh1"]).astype(f32))
    biases = biases.at[1, :C1].set(p["cb1"].astype(f32))
    biases = biases.at[2, :C2].set(p["cb2"].astype(f32))
    biases = biases.at[3, :OUTPUT_SIZE].set(p["fcb"].astype(f32))
    return wih0, wf, wcf, biases


def lstm_cnn_forward(x, p):
    """x: (B, T, INPUT_SIZE) float32, p: dict of PyTorch-layout params."""
    B, T, D = x.shape
    assert T >= 3, "epilogue specialization assumes seq_len >= 3"

    # Input: (B, T, D) -> time-major, batch/feature padded, flattened to 2D,
    # with a constant-1 lane at column D carrying the folded layer-0 bias.
    x_t = jnp.transpose(x, (1, 0, 2)).astype(jnp.float32)          # (T, B, D)
    x_pad = jnp.zeros((T, BP, DP), jnp.float32).at[:, :B, :D].set(x_t)
    x_pad = x_pad.at[:, :, D].set(1.0)
    x2d = x_pad.reshape(T * BP, DP)                                # (T*BP, DP)

    wih0, wf, wcf, biases = _pack_weights_and_biases(p)

    out_p = pl.pallas_call(
        lstm_cnn_kernel,
        out_shape=jax.ShapeDtypeStruct((BP, OUTP), jnp.float32),
        in_specs=[pl.BlockSpec(memory_space=pltpu.MemorySpace.VMEM)] * 5,
        out_specs=pl.BlockSpec(memory_space=pltpu.MemorySpace.VMEM),
        scratch_shapes=[pltpu.VMEM((T * BP, GW), jnp.float32)],
    )(x2d, wih0, wf, wcf, biases)
    return out_p[:B, :OUTPUT_SIZE]


def reference_forward(x, p):
    """Pure-JAX reference mirroring the PyTorch forward semantics."""
    B, T, _ = x.shape
    H = HIDDEN_SIZE

    def cell(xt, h, c, wih, whh, bih, bhh):
        g = xt @ wih.T + bih + h @ whh.T + bhh
        i_g, f_g, g_g, o_g = jnp.split(g, 4, axis=1)
        i_g = jax.nn.sigmoid(i_g)
        f_g = jax.nn.sigmoid(f_g)
        g_g = jnp.tanh(g_g)
        o_g = jax.nn.sigmoid(o_g)
        c = f_g * c + i_g * g_g
        h = o_g * jnp.tanh(c)
        return h, c

    h0 = c0 = h1 = c1 = jnp.zeros((B, H), jnp.float32)
    outs = []
    for t in range(T):
        h0, c0 = cell(x[:, t, :], h0, c0, p["w_ih0"], p["w_hh0"], p["b_ih0"], p["b_hh0"])
        h1, c1 = cell(h0, h1, c1, p["w_ih1"], p["w_hh1"], p["b_ih1"], p["b_hh1"])
        outs.append(h1)
    out = jnp.stack(outs, axis=1)                      # (B, T, H)

    z = jnp.transpose(out, (0, 2, 1))                  # (B, H, T)
    z = lax.conv_general_dilated(z, p["cw1"], (1,), [(1, 1)],
                                 dimension_numbers=("NCH", "OIH", "NCH"))
    z = jnp.maximum(z + p["cb1"][None, :, None], 0.0)
    z = lax.conv_general_dilated(z, p["cw2"], (1,), [(1, 1)],
                                 dimension_numbers=("NCH", "OIH", "NCH"))
    z = jnp.maximum(z + p["cb2"][None, :, None], 0.0)
    z = jnp.transpose(z, (0, 2, 1))                    # (B, T, C2)
    last = z[:, -1, :]
    return last @ p["fcw"].T + p["fcb"]


def init_params(key):
    """Deterministic parameters with PyTorch-layout shapes."""
    H, D = HIDDEN_SIZE, INPUT_SIZE
    ks = jax.random.split(key, 16)
    u = lambda k, shape, scale: jax.random.uniform(k, shape, jnp.float32, -scale, scale)
    s_lstm = 1.0 / jnp.sqrt(H)
    p = {
        "w_ih0": u(ks[0], (4 * H, D), s_lstm),
        "w_hh0": u(ks[1], (4 * H, H), s_lstm),
        "b_ih0": u(ks[2], (4 * H,), s_lstm),
        "b_hh0": u(ks[3], (4 * H,), s_lstm),
        "w_ih1": u(ks[4], (4 * H, H), s_lstm),
        "w_hh1": u(ks[5], (4 * H, H), s_lstm),
        "b_ih1": u(ks[6], (4 * H,), s_lstm),
        "b_hh1": u(ks[7], (4 * H,), s_lstm),
        "cw1": u(ks[8], (C1, H, 3), 1.0 / jnp.sqrt(H * 3)),
        "cb1": u(ks[9], (C1,), 1.0 / jnp.sqrt(H * 3)),
        "cw2": u(ks[10], (C2, C1, 3), 1.0 / jnp.sqrt(C1 * 3)),
        "cb2": u(ks[11], (C2,), 1.0 / jnp.sqrt(C1 * 3)),
        "fcw": u(ks[12], (OUTPUT_SIZE, C2), 1.0 / jnp.sqrt(C2)),
        "fcb": u(ks[13], (OUTPUT_SIZE,), 1.0 / jnp.sqrt(C2)),
    }
    return p


if __name__ == "__main__":
    key = jax.random.PRNGKey(0)
    k_x, k_p = jax.random.split(key)
    x = jax.random.normal(k_x, (BATCH, SEQ_LEN, INPUT_SIZE), jnp.float32)
    params = init_params(k_p)

    out = jax.block_until_ready(lstm_cnn_forward(x, params))
    ref = jax.block_until_ready(reference_forward(x, params))

    assert out.shape == (BATCH, OUTPUT_SIZE)
    assert jnp.allclose(out, ref, atol=1e-4, rtol=1e-4), (out, ref)

    print("KERNEL_OK")
</pallas_src>

<mosaic_0001>
module attributes {stable_mosaic.version = 11 : i64} {
  func.func @lstm_cnn_kernel(%arg0: memref<64x128xf32, #tpu.memory_space<vmem>>, %arg1: memref<128x128xf32, #tpu.memory_space<vmem>>, %arg2: memref<64x256xf32, #tpu.memory_space<vmem>>, %arg3: memref<480x128xf32, #tpu.memory_space<vmem>>, %arg4: memref<8x128xf32, #tpu.memory_space<vmem>>, %arg5: memref<8x128xf32, #tpu.memory_space<vmem>>, %arg6: memref<64x128xf32, #tpu.memory_space<vmem>>) attributes {dimension_semantics = [], scalar_prefetch = 0 : i64, scratch_operands = 1 : i64, tpu.core_type = #tpu.core_type<tc>} {
    %c0 = arith.constant 0 : index
    %c0_0 = arith.constant 0 : index
    %0 = vector.load %arg0[%c0, %c0_0] : memref<64x128xf32, #tpu.memory_space<vmem>>, vector<64x128xf32>
    %c0_1 = arith.constant 0 : index
    %c0_2 = arith.constant 0 : index
    %1 = vector.load %arg1[%c0_1, %c0_2] : memref<128x128xf32, #tpu.memory_space<vmem>>, vector<128x128xf32>
    %cst = arith.constant dense<0.000000e+00> : vector<64x128xf32>
    %2 = tpu.matmul %0, %1, %cst {dimension_numbers = #tpu.dot_dimension_numbers<[1], [0], [0], [1], [0, 0, 1, 1], [], []>} : vector<64x128xf32>, vector<128x128xf32>, vector<64x128xf32> -> vector<64x128xf32>
    %c0_3 = arith.constant 0 : index
    %c0_4 = arith.constant 0 : index
    %3 = vector.load %arg6[%c0_3, %c0_4] : memref<64x128xf32, #tpu.memory_space<vmem>>, vector<64x128xf32>
    tpu.vector_store %arg6[%c0_3, %c0_4], %2 {strides = array<i32>} : memref<64x128xf32, #tpu.memory_space<vmem>>, vector<64x128xf32>,
    %c0_5 = arith.constant 0 : index
    %c0_6 = arith.constant 0 : index
    %4 = vector.load %arg2[%c0_5, %c0_6] : memref<64x256xf32, #tpu.memory_space<vmem>>, vector<32x256xf32>
    %c32 = arith.constant 32 : index
    %c128 = arith.constant 128 : index
    %5 = vector.load %arg2[%c32, %c128] : memref<64x256xf32, #tpu.memory_space<vmem>>, vector<32x128xf32>
    %c0_7 = arith.constant 0 : index
    %c0_8 = arith.constant 0 : index
    %6 = vector.load %arg4[%c0_7, %c0_8] : memref<8x128xf32, #tpu.memory_space<vmem>>, vector<1x128xf32>
    %7 = vector.shape_cast %6 : vector<1x128xf32> to vector<1x128xf32>
    %8 = vector.broadcast %7 : vector<1x128xf32> to vector<8x128xf32>
    %cst_9 = arith.constant 0.000000e+00 : f32
    %9 = vector.broadcast %cst_9 : f32 to vector<8x32xf32>
    %c0_10 = arith.constant 0 : index
    %c0_11 = arith.constant 0 : index
    %10 = vector.load %arg6[%c0_10, %c0_11] : memref<64x128xf32, #tpu.memory_space<vmem>>, vector<8x128xf32>
    %11 = arith.negf %10 : vector<8x128xf32>
    %12 = math.exp %11 : vector<8x128xf32>
    %cst_12 = arith.constant 1.000000e+00 : f32
    %13 = vector.broadcast %cst_12 : f32 to vector<8x128xf32>
    %14 = arith.addf %13, %12 : vector<8x128xf32>
    %15 = arith.divf %13, %14 : vector<8x128xf32>
    %16 = math.tanh %10 : vector<8x128xf32>
    %17 = vector.extract_strided_slice %15 {offsets = [0, 32], sizes = [8, 32], strides = [1, 1]} : vector<8x128xf32> to vector<8x32xf32>
    %18 = arith.mulf %17, %9 : vector<8x32xf32>
    %19 = vector.extract_strided_slice %15 {offsets = [0, 0], sizes = [8, 32], strides = [1, 1]} : vector<8x128xf32> to vector<8x32xf32>
    %20 = vector.extract_strided_slice %16 {offsets = [0, 64], sizes = [8, 32], strides = [1, 1]} : vector<8x128xf32> to vector<8x32xf32>
    %21 = arith.mulf %19, %20 : vector<8x32xf32>
    %22 = arith.addf %18, %21 : vector<8x32xf32>
    %23 = vector.extract_strided_slice %15 {offsets = [0, 96], sizes = [8, 32], strides = [1, 1]} : vector<8x128xf32> to vector<8x32xf32>
    %24 = math.tanh %22 : vector<8x32xf32>
    %25 = arith.mulf %23, %24 : vector<8x32xf32>
    %cst_13 = arith.constant dense<0.000000e+00> : vector<8x256xf32>
    %26 = tpu.matmul %25, %4, %cst_13 {dimension_numbers = #tpu.dot_dimension_numbers<[1], [0], [0], [1], [0, 0, 1, 1], [], []>} : vector<8x32xf32>, vector<32x256xf32>, vector<8x256xf32> -> vector<8x256xf32>
    %27 = vector.extract_strided_slice %26 {offsets = [0, 128], sizes = [8, 128], strides = [1, 1]} : vector<8x256xf32> to vector<8x128xf32>
    %cst_14 = arith.constant dense<0.000000e+00> : vector<8x128xf32>
    %28 = tpu.matmul %9, %5, %cst_14 {dimension_numbers = #tpu.dot_dimension_numbers<[1], [0], [0], [1], [0, 0, 1, 1], [], []>} : vector<8x32xf32>, vector<32x128xf32>, vector<8x128xf32> -> vector<8x128xf32>
    %29 = arith.addf %27, %28 : vector<8x128xf32>
    %30 = arith.addf %29, %8 : vector<8x128xf32>
    %31 = arith.negf %30 : vector<8x128xf32>
    %32 = math.exp %31 : vector<8x128xf32>
    %cst_15 = arith.constant 1.000000e+00 : f32
    %33 = vector.broadcast %cst_15 : f32 to vector<8x128xf32>
    %34 = arith.addf %33, %32 : vector<8x128xf32>
    %35 = arith.divf %33, %34 : vector<8x128xf32>
    %36 = math.tanh %30 : vector<8x128xf32>
    %37 = vector.extract_strided_slice %35 {offsets = [0, 32], sizes = [8, 32], strides = [1, 1]} : vector<8x128xf32> to vector<8x32xf32>
    %38 = arith.mulf %37, %9 : vector<8x32xf32>
    %39 = vector.extract_strided_slice %35 {offsets = [0, 0], sizes = [8, 32], strides = [1, 1]} : vector<8x128xf32> to vector<8x32xf32>
    %40 = vector.extract_strided_slice %36 {offsets = [0, 64], sizes = [8, 32], strides = [1, 1]} : vector<8x128xf32> to vector<8x32xf32>
    %41 = arith.mulf %39, %40 : vector<8x32xf32>
    %42 = arith.addf %38, %41 : vector<8x32xf32>
    %43 = vector.extract_strided_slice %35 {offsets = [0, 96], sizes = [8, 32], strides = [1, 1]} : vector<8x128xf32> to vector<8x32xf32>
    %44 = math.tanh %42 : vector<8x32xf32>
    %45 = arith.mulf %43, %44 : vector<8x32xf32>
    %c8 = arith.constant 8 : index
    %c0_16 = arith.constant 0 : index
    %46 = vector.load %arg6[%c8, %c0_16] : memref<64x128xf32, #tpu.memory_space<vmem>>, vector<8x128xf32>
    %47 = vector.extract_strided_slice %26 {offsets = [0, 0], sizes = [8, 128], strides = [1, 1]} : vector<8x256xf32> to vector<8x128xf32>
    %48 = arith.addf %46, %47 : vector<8x128xf32>
    %49 = arith.negf %48 : vector<8x128xf32>
    %50 = math.exp %49 : vector<8x128xf32>
    %cst_17 = arith.constant 1.000000e+00 : f32
    %51 = vector.broadcast %cst_17 : f32 to vector<8x128xf32>
    %52 = arith.addf %51, %50 : vector<8x128xf32>
    %53 = arith.divf %51, %52 : vector<8x128xf32>
    %54 = math.tanh %48 : vector<8x128xf32>
    %55 = vector.extract_strided_slice %53 {offsets = [0, 32], sizes = [8, 32], strides = [1, 1]} : vector<8x128xf32> to vector<8x32xf32>
    %56 = arith.mulf %55, %22 : vector<8x32xf32>
    %57 = vector.extract_strided_slice %53 {offsets = [0, 0], sizes = [8, 32], strides = [1, 1]} : vector<8x128xf32> to vector<8x32xf32>
    %58 = vector.extract_strided_slice %54 {offsets = [0, 64], sizes = [8, 32], strides = [1, 1]} : vector<8x128xf32> to vector<8x32xf32>
    %59 = arith.mulf %57, %58 : vector<8x32xf32>
    %60 = arith.addf %56, %59 : vector<8x32xf32>
    %61 = vector.extract_strided_slice %53 {offsets = [0, 96], sizes = [8, 32], strides = [1, 1]} : vector<8x128xf32> to vector<8x32xf32>
    %62 = math.tanh %60 : vector<8x32xf32>
    %63 = arith.mulf %61, %62 : vector<8x32xf32>
    %cst_18 = arith.constant dense<0.000000e+00> : vector<8x256xf32>
    %64 = tpu.matmul %63, %4, %cst_18 {dimension_numbers = #tpu.dot_dimension_numbers<[1], [0], [0], [1], [0, 0, 1, 1], [], []>} : vector<8x32xf32>, vector<32x256xf32>, vector<8x256xf32> -> vector<8x256xf32>
    %65 = vector.extract_strided_slice %64 {offsets = [0, 128], sizes = [8, 128], strides = [1, 1]} : vector<8x256xf32> to vector<8x128xf32>
    %cst_19 = arith.constant dense<0.000000e+00> : vector<8x128xf32>
    %66 = tpu.matmul %45, %5, %cst_19 {dimension_numbers = #tpu.dot_dimension_numbers<[1], [0], [0], [1], [0, 0, 1, 1], [], []>} : vector<8x32xf32>, vector<32x128xf32>, vector<8x128xf32> -> vector<8x128xf32>
    %67 = arith.addf %65, %66 : vector<8x128xf32>
    %68 = arith.addf %67, %8 : vector<8x128xf32>
    %69 = arith.negf %68 : vector<8x128xf32>
    %70 = math.exp %69 : vector<8x128xf32>
    %cst_20 = arith.constant 1.000000e+00 : f32
    %71 = vector.broadcast %cst_20 : f32 to vector<8x128xf32>
    %72 = arith.addf %71, %70 : vector<8x128xf32>
    %73 = arith.divf %71, %72 : vector<8x128xf32>
    %74 = math.tanh %68 : vector<8x128xf32>
    %75 = vector.extract_strided_slice %73 {offsets = [0, 32], sizes = [8, 32], strides = [1, 1]} : vector<8x128xf32> to vector<8x32xf32>
    %76 = arith.mulf %75, %42 : vector<8x32xf32>
    %77 = vector.extract_strided_slice %73 {offsets = [0, 0], sizes = [8, 32], strides = [1, 1]} : vector<8x128xf32> to vector<8x32xf32>
    %78 = vector.extract_strided_slice %74 {offsets = [0, 64], sizes = [8, 32], strides = [1, 1]} : vector<8x128xf32> to vector<8x32xf32>
    %79 = arith.mulf %77, %78 : vector<8x32xf32>
    %80 = arith.addf %76, %79 : vector<8x32xf32>
    %81 = vector.extract_strided_slice %73 {offsets = [0, 96], sizes = [8, 32], strides = [1, 1]} : vector<8x128xf32> to vector<8x32xf32>
    %82 = math.tanh %80 : vector<8x32xf32>
    %83 = arith.mulf %81, %82 : vector<8x32xf32>
    %c16 = arith.constant 16 : index
    %c0_21 = arith.constant 0 : index
    %84 = vector.load %arg6[%c16, %c0_21] : memref<64x128xf32, #tpu.memory_space<vmem>>, vector<8x128xf32>
    %85 = vector.extract_strided_slice %64 {offsets = [0, 0], sizes = [8, 128], strides = [1, 1]} : vector<8x256xf32> to vector<8x128xf32>
    %86 = arith.addf %84, %85 : vector<8x128xf32>
    %87 = arith.negf %86 : vector<8x128xf32>
    %88 = math.exp %87 : vector<8x128xf32>
    %cst_22 = arith.constant 1.000000e+00 : f32
    %89 = vector.broadcast %cst_22 : f32 to vector<8x128xf32>
    %90 = arith.addf %89, %88 : vector<8x128xf32>
    %91 = arith.divf %89, %90 : vector<8x128xf32>
    %92 = math.tanh %86 : vector<8x128xf32>
    %93 = vector.extract_strided_slice %91 {offsets = [0, 32], sizes = [8, 32], strides = [1, 1]} : vector<8x128xf32> to vector<8x32xf32>
    %94 = arith.mulf %93, %60 : vector<8x32xf32>
    %95 = vector.extract_strided_slice %91 {offsets = [0, 0], sizes = [8, 32], strides = [1, 1]} : vector<8x128xf32> to vector<8x32xf32>
    %96 = vector.extract_strided_slice %92 {offsets = [0, 64], sizes = [8, 32], strides = [1, 1]} : vector<8x128xf32> to vector<8x32xf32>
    %97 = arith.mulf %95, %96 : vector<8x32xf32>
    %98 = arith.addf %94, %97 : vector<8x32xf32>
    %99 = vector.extract_strided_slice %91 {offsets = [0, 96], sizes = [8, 32], strides = [1, 1]} : vector<8x128xf32> to vector<8x32xf32>
    %100 = math.tanh %98 : vector<8x32xf32>
    %101 = arith.mulf %99, %100 : vector<8x32xf32>
    %cst_23 = arith.constant dense<0.000000e+00> : vector<8x256xf32>
    %102 = tpu.matmul %101, %4, %cst_23 {dimension_numbers = #tpu.dot_dimension_numbers<[1], [0], [0], [1], [0, 0, 1, 1], [], []>} : vector<8x32xf32>, vector<32x256xf32>, vector<8x256xf32> -> vector<8x256xf32>
    %103 = vector.extract_strided_slice %102 {offsets = [0, 128], sizes = [8, 128], strides = [1, 1]} : vector<8x256xf32> to vector<8x128xf32>
    %cst_24 = arith.constant dense<0.000000e+00> : vector<8x128xf32>
    %104 = tpu.matmul %83, %5, %cst_24 {dimension_numbers = #tpu.dot_dimension_numbers<[1], [0], [0], [1], [0, 0, 1, 1], [], []>} : vector<8x32xf32>, vector<32x128xf32>, vector<8x128xf32> -> vector<8x128xf32>
    %105 = arith.addf %103, %104 : vector<8x128xf32>
    %106 = arith.addf %105, %8 : vector<8x128xf32>
    %107 = arith.negf %106 : vector<8x128xf32>
    %108 = math.exp %107 : vector<8x128xf32>
    %cst_25 = arith.constant 1.000000e+00 : f32
    %109 = vector.broadcast %cst_25 : f32 to vector<8x128xf32>
    %110 = arith.addf %109, %108 : vector<8x128xf32>
    %111 = arith.divf %109, %110 : vector<8x128xf32>
    %112 = math.tanh %106 : vector<8x128xf32>
    %113 = vector.extract_strided_slice %111 {offsets = [0, 32], sizes = [8, 32], strides = [1, 1]} : vector<8x128xf32> to vector<8x32xf32>
    %114 = arith.mulf %113, %80 : vector<8x32xf32>
    %115 = vector.extract_strided_slice %111 {offsets = [0, 0], sizes = [8, 32], strides = [1, 1]} : vector<8x128xf32> to vector<8x32xf32>
    %116 = vector.extract_strided_slice %112 {offsets = [0, 64], sizes = [8, 32], strides = [1, 1]} : vector<8x128xf32> to vector<8x32xf32>
    %117 = arith.mulf %115, %116 : vector<8x32xf32>
    %118 = arith.addf %114, %117 : vector<8x32xf32>
    %119 = vector.extract_strided_slice %111 {offsets = [0, 96], sizes = [8, 32], strides = [1, 1]} : vector<8x128xf32> to vector<8x32xf32>
    %120 = math.tanh %118 : vector<8x32xf32>
    %121 = arith.mulf %119, %120 : vector<8x32xf32>
    %c24 = arith.constant 24 : index
    %c0_26 = arith.constant 0 : index
    %122 = vector.load %arg6[%c24, %c0_26] : memref<64x128xf32, #tpu.memory_space<vmem>>, vector<8x128xf32>
    %123 = vector.extract_strided_slice %102 {offsets = [0, 0], sizes = [8, 128], strides = [1, 1]} : vector<8x256xf32> to vector<8x128xf32>
    %124 = arith.addf %122, %123 : vector<8x128xf32>
    %125 = arith.negf %124 : vector<8x128xf32>
    %126 = math.exp %125 : vector<8x128xf32>
    %cst_27 = arith.constant 1.000000e+00 : f32
    %127 = vector.broadcast %cst_27 : f32 to vector<8x128xf32>
    %128 = arith.addf %127, %126 : vector<8x128xf32>
    %129 = arith.divf %127, %128 : vector<8x128xf32>
    %130 = math.tanh %124 : vector<8x128xf32>
    %131 = vector.extract_strided_slice %129 {offsets = [0, 32], sizes = [8, 32], strides = [1, 1]} : vector<8x128xf32> to vector<8x32xf32>
    %132 = arith.mulf %131, %98 : vector<8x32xf32>
    %133 = vector.extract_strided_slice %129 {offsets = [0, 0], sizes = [8, 32], strides = [1, 1]} : vector<8x128xf32> to vector<8x32xf32>
    %134 = vector.extract_strided_slice %130 {offsets = [0, 64], sizes = [8, 32], strides = [1, 1]} : vector<8x128xf32> to vector<8x32xf32>
    %135 = arith.mulf %133, %134 : vector<8x32xf32>
    %136 = arith.addf %132, %135 : vector<8x32xf32>
    %137 = vector.extract_strided_slice %129 {offsets = [0, 96], sizes = [8, 32], strides = [1, 1]} : vector<8x128xf32> to vector<8x32xf32>
    %138 = math.tanh %136 : vector<8x32xf32>
    %139 = arith.mulf %137, %138 : vector<8x32xf32>
    %cst_28 = arith.constant dense<0.000000e+00> : vector<8x256xf32>
    %140 = tpu.matmul %139, %4, %cst_28 {dimension_numbers = #tpu.dot_dimension_numbers<[1], [0], [0], [1], [0, 0, 1, 1], [], []>} : vector<8x32xf32>, vector<32x256xf32>, vector<8x256xf32> -> vector<8x256xf32>
    %141 = vector.extract_strided_slice %140 {offsets = [0, 128], sizes = [8, 128], strides = [1, 1]} : vector<8x256xf32> to vector<8x128xf32>
    %cst_29 = arith.constant dense<0.000000e+00> : vector<8x128xf32>
    %142 = tpu.matmul %121, %5, %cst_29 {dimension_numbers = #tpu.dot_dimension_numbers<[1], [0], [0], [1], [0, 0, 1, 1], [], []>} : vector<8x32xf32>, vector<32x128xf32>, vector<8x128xf32> -> vector<8x128xf32>
    %143 = arith.addf %141, %142 : vector<8x128xf32>
    %144 = arith.addf %143, %8 : vector<8x128xf32>
    %145 = arith.negf %144 : vector<8x128xf32>
    %146 = math.exp %145 : vector<8x128xf32>
    %cst_30 = arith.constant 1.000000e+00 : f32
    %147 = vector.broadcast %cst_30 : f32 to vector<8x128xf32>
    %148 = arith.addf %147, %146 : vector<8x128xf32>
    %149 = arith.divf %147, %148 : vector<8x128xf32>
    %150 = math.tanh %144 : vector<8x128xf32>
    %151 = vector.extract_strided_slice %149 {offsets = [0, 32], sizes = [8, 32], strides = [1, 1]} : vector<8x128xf32> to vector<8x32xf32>
    %152 = arith.mulf %151, %118 : vector<8x32xf32>
    %153 = vector.extract_strided_slice %149 {offsets = [0, 0], sizes = [8, 32], strides = [1, 1]} : vector<8x128xf32> to vector<8x32xf32>
    %154 = vector.extract_strided_slice %150 {offsets = [0, 64], sizes = [8, 32], strides = [1, 1]} : vector<8x128xf32> to vector<8x32xf32>
    %155 = arith.mulf %153, %154 : vector<8x32xf32>
    %156 = arith.addf %152, %155 : vector<8x32xf32>
    %157 = vector.extract_strided_slice %149 {offsets = [0, 96], sizes = [8, 32], strides = [1, 1]} : vector<8x128xf32> to vector<8x32xf32>
    %158 = math.tanh %156 : vector<8x32xf32>
    %159 = arith.mulf %157, %158 : vector<8x32xf32>
    %c32_31 = arith.constant 32 : index
    %c0_32 = arith.constant 0 : index
    %160 = vector.load %arg6[%c32_31, %c0_32] : memref<64x128xf32, #tpu.memory_space<vmem>>, vector<8x128xf32>
    %161 = vector.extract_strided_slice %140 {offsets = [0, 0], sizes = [8, 128], strides = [1, 1]} : vector<8x256xf32> to vector<8x128xf32>
    %162 = arith.addf %160, %161 : vector<8x128xf32>
    %163 = arith.negf %162 : vector<8x128xf32>
    %164 = math.exp %163 : vector<8x128xf32>
    %cst_33 = arith.constant 1.000000e+00 : f32
    %165 = vector.broadcast %cst_33 : f32 to vector<8x128xf32>
    %166 = arith.addf %165, %164 : vector<8x128xf32>
    %167 = arith.divf %165, %166 : vector<8x128xf32>
    %168 = math.tanh %162 : vector<8x128xf32>
    %169 = vector.extract_strided_slice %167 {offsets = [0, 32], sizes = [8, 32], strides = [1, 1]} : vector<8x128xf32> to vector<8x32xf32>
    %170 = arith.mulf %169, %136 : vector<8x32xf32>
    %171 = vector.extract_strided_slice %167 {offsets = [0, 0], sizes = [8, 32], strides = [1, 1]} : vector<8x128xf32> to vector<8x32xf32>
    %172 = vector.extract_strided_slice %168 {offsets = [0, 64], sizes = [8, 32], strides = [1, 1]} : vector<8x128xf32> to vector<8x32xf32>
    %173 = arith.mulf %171, %172 : vector<8x32xf32>
    %174 = arith.addf %170, %173 : vector<8x32xf32>
    %175 = vector.extract_strided_slice %167 {offsets = [0, 96], sizes = [8, 32], strides = [1, 1]} : vector<8x128xf32> to vector<8x32xf32>
    %176 = math.tanh %174 : vector<8x32xf32>
    %177 = arith.mulf %175, %176 : vector<8x32xf32>
    %cst_34 = arith.constant dense<0.000000e+00> : vector<8x256xf32>
    %178 = tpu.matmul %177, %4, %cst_34 {dimension_numbers = #tpu.dot_dimension_numbers<[1], [0], [0], [1], [0, 0, 1, 1], [], []>} : vector<8x32xf32>, vector<32x256xf32>, vector<8x256xf32> -> vector<8x256xf32>
    %179 = vector.extract_strided_slice %178 {offsets = [0, 128], sizes = [8, 128], strides = [1, 1]} : vector<8x256xf32> to vector<8x128xf32>
    %cst_35 = arith.constant dense<0.000000e+00> : vector<8x128xf32>
    %180 = tpu.matmul %159, %5, %cst_35 {dimension_numbers = #tpu.dot_dimension_numbers<[1], [0], [0], [1], [0, 0, 1, 1], [], []>} : vector<8x32xf32>, vector<32x128xf32>, vector<8x128xf32> -> vector<8x128xf32>
    %181 = arith.addf %179, %180 : vector<8x128xf32>
    %182 = arith.addf %181, %8 : vector<8x128xf32>
    %183 = arith.negf %182 : vector<8x128xf32>
    %184 = math.exp %183 : vector<8x128xf32>
    %cst_36 = arith.constant 1.000000e+00 : f32
    %185 = vector.broadcast %cst_36 : f32 to vector<8x128xf32>
    %186 = arith.addf %185, %184 : vector<8x128xf32>
    %187 = arith.divf %185, %186 : vector<8x128xf32>
    %188 = math.tanh %182 : vector<8x128xf32>
    %189 = vector.extract_strided_slice %187 {offsets = [0, 32], sizes = [8, 32], strides = [1, 1]} : vector<8x128xf32> to vector<8x32xf32>
    %190 = arith.mulf %189, %156 : vector<8x32xf32>
    %191 = vector.extract_strided_slice %187 {offsets = [0, 0], sizes = [8, 32], strides = [1, 1]} : vector<8x128xf32> to vector<8x32xf32>
    %192 = vector.extract_strided_slice %188 {offsets = [0, 64], sizes = [8, 32], strides = [1, 1]} : vector<8x128xf32> to vector<8x32xf32>
    %193 = arith.mulf %191, %192 : vector<8x32xf32>
    %194 = arith.addf %190, %193 : vector<8x32xf32>
    %195 = vector.extract_strided_slice %187 {offsets = [0, 96], sizes = [8, 32], strides = [1, 1]} : vector<8x128xf32> to vector<8x32xf32>
    %196 = math.tanh %194 : vector<8x32xf32>
    %197 = arith.mulf %195, %196 : vector<8x32xf32>
    %c40 = arith.constant 40 : index
    %c0_37 = arith.constant 0 : index
    %198 = vector.load %arg6[%c40, %c0_37] : memref<64x128xf32, #tpu.memory_space<vmem>>, vector<8x128xf32>
    %199 = vector.extract_strided_slice %178 {offsets = [0, 0], sizes = [8, 128], strides = [1, 1]} : vector<8x256xf32> to vector<8x128xf32>
    %200 = arith.addf %198, %199 : vector<8x128xf32>
    %201 = arith.negf %200 : vector<8x128xf32>
    %202 = math.exp %201 : vector<8x128xf32>
    %cst_38 = arith.constant 1.000000e+00 : f32
    %203 = vector.broadcast %cst_38 : f32 to vector<8x128xf32>
    %204 = arith.addf %203, %202 : vector<8x128xf32>
    %205 = arith.divf %203, %204 : vector<8x128xf32>
    %206 = math.tanh %200 : vector<8x128xf32>
    %207 = vector.extract_strided_slice %205 {offsets = [0, 32], sizes = [8, 32], strides = [1, 1]} : vector<8x128xf32> to vector<8x32xf32>
    %208 = arith.mulf %207, %174 : vector<8x32xf32>
    %209 = vector.extract_strided_slice %205 {offsets = [0, 0], sizes = [8, 32], strides = [1, 1]} : vector<8x128xf32> to vector<8x32xf32>
    %210 = vector.extract_strided_slice %206 {offsets = [0, 64], sizes = [8, 32], strides = [1, 1]} : vector<8x128xf32> to vector<8x32xf32>
    %211 = arith.mulf %209, %210 : vector<8x32xf32>
    %212 = arith.addf %208, %211 : vector<8x32xf32>
    %213 = vector.extract_strided_slice %205 {offsets = [0, 96], sizes = [8, 32], strides = [1, 1]} : vector<8x128xf32> to vector<8x32xf32>
    %214 = math.tanh %212 : vector<8x32xf32>
    %215 = arith.mulf %213, %214 : vector<8x32xf32>
    %cst_39 = arith.constant dense<0.000000e+00> : vector<8x256xf32>
    %216 = tpu.matmul %215, %4, %cst_39 {dimension_numbers = #tpu.dot_dimension_numbers<[1], [0], [0], [1], [0, 0, 1, 1], [], []>} : vector<8x32xf32>, vector<32x256xf32>, vector<8x256xf32> -> vector<8x256xf32>
    %217 = vector.extract_strided_slice %216 {offsets = [0, 128], sizes = [8, 128], strides = [1, 1]} : vector<8x256xf32> to vector<8x128xf32>
    %cst_40 = arith.constant dense<0.000000e+00> : vector<8x128xf32>
    %218 = tpu.matmul %197, %5, %cst_40 {dimension_numbers = #tpu.dot_dimension_numbers<[1], [0], [0], [1], [0, 0, 1, 1], [], []>} : vector<8x32xf32>, vector<32x128xf32>, vector<8x128xf32> -> vector<8x128xf32>
    %219 = arith.addf %217, %218 : vector<8x128xf32>
    %220 = arith.addf %219, %8 : vector<8x128xf32>
    %221 = arith.negf %220 : vector<8x128xf32>
    %222 = math.exp %221 : vector<8x128xf32>
    %cst_41 = arith.constant 1.000000e+00 : f32
    %223 = vector.broadcast %cst_41 : f32 to vector<8x128xf32>
    %224 = arith.addf %223, %222 : vector<8x128xf32>
    %225 = arith.divf %223, %224 : vector<8x128xf32>
    %226 = math.tanh %220 : vector<8x128xf32>
    %227 = vector.extract_strided_slice %225 {offsets = [0, 32], sizes = [8, 32], strides = [1, 1]} : vector<8x128xf32> to vector<8x32xf32>
    %228 = arith.mulf %227, %194 : vector<8x32xf32>
    %229 = vector.extract_strided_slice %225 {offsets = [0, 0], sizes = [8, 32], strides = [1, 1]} : vector<8x128xf32> to vector<8x32xf32>
    %230 = vector.extract_strided_slice %226 {offsets = [0, 64], sizes = [8, 32], strides = [1, 1]} : vector<8x128xf32> to vector<8x32xf32>
    %231 = arith.mulf %229, %230 : vector<8x32xf32>
    %232 = arith.addf %228, %231 : vector<8x32xf32>
    %233 = vector.extract_strided_slice %225 {offsets = [0, 96], sizes = [8, 32], strides = [1, 1]} : vector<8x128xf32> to vector<8x32xf32>
    %234 = math.tanh %232 : vector<8x32xf32>
    %235 = arith.mulf %233, %234 : vector<8x32xf32>
    %c48 = arith.constant 48 : index
    %c0_42 = arith.constant 0 : index
    %236 = vector.load %arg6[%c48, %c0_42] : memref<64x128xf32, #tpu.memory_space<vmem>>, vector<8x128xf32>
    %237 = vector.extract_strided_slice %216 {offsets = [0, 0], sizes = [8, 128], strides = [1, 1]} : vector<8x256xf32> to vector<8x128xf32>
    %238 = arith.addf %236, %237 : vector<8x128xf32>
    %239 = arith.negf %238 : vector<8x128xf32>
    %240 = math.exp %239 : vector<8x128xf32>
    %cst_43 = arith.constant 1.000000e+00 : f32
    %241 = vector.broadcast %cst_43 : f32 to vector<8x128xf32>
    %242 = arith.addf %241, %240 : vector<8x128xf32>
    %243 = arith.divf %241, %242 : vector<8x128xf32>
    %244 = math.tanh %238 : vector<8x128xf32>
    %245 = vector.extract_strided_slice %243 {offsets = [0, 32], sizes = [8, 32], strides = [1, 1]} : vector<8x128xf32> to vector<8x32xf32>
    %246 = arith.mulf %245, %212 : vector<8x32xf32>
    %247 = vector.extract_strided_slice %243 {offsets = [0, 0], sizes = [8, 32], strides = [1, 1]} : vector<8x128xf32> to vector<8x32xf32>
    %248 = vector.extract_strided_slice %244 {offsets = [0, 64], sizes = [8, 32], strides = [1, 1]} : vector<8x128xf32> to vector<8x32xf32>
    %249 = arith.mulf %247, %248 : vector<8x32xf32>
    %250 = arith.addf %246, %249 : vector<8x32xf32>
    %251 = vector.extract_strided_slice %243 {offsets = [0, 96], sizes = [8, 32], strides = [1, 1]} : vector<8x128xf32> to vector<8x32xf32>
    %252 = math.tanh %250 : vector<8x32xf32>
    %253 = arith.mulf %251, %252 : vector<8x32xf32>
    %cst_44 = arith.constant dense<0.000000e+00> : vector<8x256xf32>
    %254 = tpu.matmul %253, %4, %cst_44 {dimension_numbers = #tpu.dot_dimension_numbers<[1], [0], [0], [1], [0, 0, 1, 1], [], []>} : vector<8x32xf32>, vector<32x256xf32>, vector<8x256xf32> -> vector<8x256xf32>
    %255 = vector.extract_strided_slice %254 {offsets = [0, 128], sizes = [8, 128], strides = [1, 1]} : vector<8x256xf32> to vector<8x128xf32>
    %cst_45 = arith.constant dense<0.000000e+00> : vector<8x128xf32>
    %256 = tpu.matmul %235, %5, %cst_45 {dimension_numbers = #tpu.dot_dimension_numbers<[1], [0], [0], [1], [0, 0, 1, 1], [], []>} : vector<8x32xf32>, vector<32x128xf32>, vector<8x128xf32> -> vector<8x128xf32>
    %257 = arith.addf %255, %256 : vector<8x128xf32>
    %258 = arith.addf %257, %8 : vector<8x128xf32>
    %259 = arith.negf %258 : vector<8x128xf32>
    %260 = math.exp %259 : vector<8x128xf32>
    %cst_46 = arith.constant 1.000000e+00 : f32
    %261 = vector.broadcast %cst_46 : f32 to vector<8x128xf32>
    %262 = arith.addf %261, %260 : vector<8x128xf32>
    %263 = arith.divf %261, %262 : vector<8x128xf32>
    %264 = math.tanh %258 : vector<8x128xf32>
    %265 = vector.extract_strided_slice %263 {offsets = [0, 32], sizes = [8, 32], strides = [1, 1]} : vector<8x128xf32> to vector<8x32xf32>
    %266 = arith.mulf %265, %232 : vector<8x32xf32>
    %267 = vector.extract_strided_slice %263 {offsets = [0, 0], sizes = [8, 32], strides = [1, 1]} : vector<8x128xf32> to vector<8x32xf32>
    %268 = vector.extract_strided_slice %264 {offsets = [0, 64], sizes = [8, 32], strides = [1, 1]} : vector<8x128xf32> to vector<8x32xf32>
    %269 = arith.mulf %267, %268 : vector<8x32xf32>
    %270 = arith.addf %266, %269 : vector<8x32xf32>
    %271 = vector.extract_strided_slice %263 {offsets = [0, 96], sizes = [8, 32], strides = [1, 1]} : vector<8x128xf32> to vector<8x32xf32>
    %272 = math.tanh %270 : vector<8x32xf32>
    %273 = arith.mulf %271, %272 : vector<8x32xf32>
    %c56 = arith.constant 56 : index
    %c0_47 = arith.constant 0 : index
    %274 = vector.load %arg6[%c56, %c0_47] : memref<64x128xf32, #tpu.memory_space<vmem>>, vector<8x128xf32>
    %275 = vector.extract_strided_slice %254 {offsets = [0, 0], sizes = [8, 128], strides = [1, 1]} : vector<8x256xf32> to vector<8x128xf32>
    %276 = arith.addf %274, %275 : vector<8x128xf32>
    %277 = arith.negf %276 : vector<8x128xf32>
    %278 = math.exp %277 : vector<8x128xf32>
    %cst_48 = arith.constant 1.000000e+00 : f32
    %279 = vector.broadcast %cst_48 : f32 to vector<8x128xf32>
    %280 = arith.addf %279, %278 : vector<8x128xf32>
    %281 = arith.divf %279, %280 : vector<8x128xf32>
    %282 = math.tanh %276 : vector<8x128xf32>
    %283 = vector.extract_strided_slice %281 {offsets = [0, 32], sizes = [8, 32], strides = [1, 1]} : vector<8x128xf32> to vector<8x32xf32>
    %284 = arith.mulf %283, %250 : vector<8x32xf32>
    %285 = vector.extract_strided_slice %281 {offsets = [0, 0], sizes = [8, 32], strides = [1, 1]} : vector<8x128xf32> to vector<8x32xf32>
    %286 = vector.extract_strided_slice %282 {offsets = [0, 64], sizes = [8, 32], strides = [1, 1]} : vector<8x128xf32> to vector<8x32xf32>
    %287 = arith.mulf %285, %286 : vector<8x32xf32>
    %288 = arith.addf %284, %287 : vector<8x32xf32>
    %289 = vector.extract_strided_slice %281 {offsets = [0, 96], sizes = [8, 32], strides = [1, 1]} : vector<8x128xf32> to vector<8x32xf32>
    %290 = math.tanh %288 : vector<8x32xf32>
    %291 = arith.mulf %289, %290 : vector<8x32xf32>
    %c0_49 = arith.constant 0 : index
    %c128_50 = arith.constant 128 : index
    %292 = vector.load %arg2[%c0_49, %c128_50] : memref<64x256xf32, #tpu.memory_space<vmem>>, vector<32x128xf32>
    %cst_51 = arith.constant dense<0.000000e+00> : vector<8x128xf32>
    %293 = tpu.matmul %291, %292, %cst_51 {dimension_numbers = #tpu.dot_dimension_numbers<[1], [0], [0], [1], [0, 0, 1, 1], [], []>} : vector<8x32xf32>, vector<32x128xf32>, vector<8x128xf32> -> vector<8x128xf32>
    %cst_52 = arith.constant dense<0.000000e+00> : vector<8x128xf32>
    %294 = tpu.matmul %273, %5, %cst_52 {dimension_numbers = #tpu.dot_dimension_numbers<[1], [0], [0], [1], [0, 0, 1, 1], [], []>} : vector<8x32xf32>, vector<32x128xf32>, vector<8x128xf32> -> vector<8x128xf32>
    %295 = arith.addf %293, %294 : vector<8x128xf32>
    %296 = arith.addf %295, %8 : vector<8x128xf32>
    %297 = arith.negf %296 : vector<8x128xf32>
    %298 = math.exp %297 : vector<8x128xf32>
    %cst_53 = arith.constant 1.000000e+00 : f32
    %299 = vector.broadcast %cst_53 : f32 to vector<8x128xf32>
    %300 = arith.addf %299, %298 : vector<8x128xf32>
    %301 = arith.divf %299, %300 : vector<8x128xf32>
    %302 = math.tanh %296 : vector<8x128xf32>
    %303 = vector.extract_strided_slice %301 {offsets = [0, 32], sizes = [8, 32], strides = [1, 1]} : vector<8x128xf32> to vector<8x32xf32>
    %304 = arith.mulf %303, %270 : vector<8x32xf32>
    %305 = vector.extract_strided_slice %301 {offsets = [0, 0], sizes = [8, 32], strides = [1, 1]} : vector<8x128xf32> to vector<8x32xf32>
    %306 = vector.extract_strided_slice %302 {offsets = [0, 64], sizes = [8, 32], strides = [1, 1]} : vector<8x128xf32> to vector<8x32xf32>
    %307 = arith.mulf %305, %306 : vector<8x32xf32>
    %308 = arith.addf %304, %307 : vector<8x32xf32>
    %309 = vector.extract_strided_slice %301 {offsets = [0, 96], sizes = [8, 32], strides = [1, 1]} : vector<8x128xf32> to vector<8x32xf32>
    %310 = math.tanh %308 : vector<8x32xf32>
    %311 = arith.mulf %309, %310 : vector<8x32xf32>
    %c0_54 = arith.constant 0 : index
    %c0_55 = arith.constant 0 : index
    %312 = vector.load %arg3[%c0_54, %c0_55] : memref<480x128xf32, #tpu.memory_space<vmem>>, vector<32x128xf32>
    %c32_56 = arith.constant 32 : index
    %c0_57 = arith.constant 0 : index
    %313 = vector.load %arg3[%c32_56, %c0_57] : memref<480x128xf32, #tpu.memory_space<vmem>>, vector<32x128xf32>
    %c64 = arith.constant 64 : index
    %c0_58 = arith.constant 0 : index
    %314 = vector.load %arg3[%c64, %c0_58] : memref<480x128xf32, #tpu.memory_space<vmem>>, vector<32x128xf32>
    %c1 = arith.constant 1 : index
    %c0_59 = arith.constant 0 : index
    %315 = vector.load %arg4[%c1, %c0_59] : memref<8x128xf32, #tpu.memory_space<vmem>>, vector<1x128xf32>
    %cst_60 = arith.constant dense<0.000000e+00> : vector<8x128xf32>
    %316 = tpu.matmul %235, %312, %cst_60 {dimension_numbers = #tpu.dot_dimension_numbers<[1], [0], [0], [1], [0, 0, 1, 1], [], []>} : vector<8x32xf32>, vector<32x128xf32>, vector<8x128xf32> -> vector<8x128xf32>
    %cst_61 = arith.constant dense<0.000000e+00> : vector<8x128xf32>
    %317 = tpu.matmul %273, %313, %cst_61 {dimension_numbers = #tpu.dot_dimension_numbers<[1], [0], [0], [1], [0, 0, 1, 1], [], []>} : vector<8x32xf32>, vector<32x128xf32>, vector<8x128xf32> -> vector<8x128xf32>
    %318 = arith.addf %316, %317 : vector<8x128xf32>
    %cst_62 = arith.constant dense<0.000000e+00> : vector<8x128xf32>
    %319 = tpu.matmul %311, %314, %cst_62 {dimension_numbers = #tpu.dot_dimension_numbers<[1], [0], [0], [1], [0, 0, 1, 1], [], []>} : vector<8x32xf32>, vector<32x128xf32>, vector<8x128xf32> -> vector<8x128xf32>
    %320 = arith.addf %318, %319 : vector<8x128xf32>
    %321 = vector.broadcast %315 : vector<1x128xf32> to vector<8x128xf32>
    %322 = arith.addf %320, %321 : vector<8x128xf32>
    %cst_63 = arith.constant 0.000000e+00 : f32
    %323 = vector.broadcast %cst_63 : f32 to vector<8x128xf32>
    %324 = arith.maximumf %322, %323 : vector<8x128xf32>
    %cst_64 = arith.constant dense<0.000000e+00> : vector<8x128xf32>
    %325 = tpu.matmul %273, %312, %cst_64 {dimension_numbers = #tpu.dot_dimension_numbers<[1], [0], [0], [1], [0, 0, 1, 1], [], []>} : vector<8x32xf32>, vector<32x128xf32>, vector<8x128xf32> -> vector<8x128xf32>
    %cst_65 = arith.constant dense<0.000000e+00> : vector<8x128xf32>
    %326 = tpu.matmul %311, %313, %cst_65 {dimension_numbers = #tpu.dot_dimension_numbers<[1], [0], [0], [1], [0, 0, 1, 1], [], []>} : vector<8x32xf32>, vector<32x128xf32>, vector<8x128xf32> -> vector<8x128xf32>
    %327 = arith.addf %325, %326 : vector<8x128xf32>
    %328 = vector.broadcast %315 : vector<1x128xf32> to vector<8x128xf32>
    %329 = arith.addf %327, %328 : vector<8x128xf32>
    %cst_66 = arith.constant 0.000000e+00 : f32
    %330 = vector.broadcast %cst_66 : f32 to vector<8x128xf32>
    %331 = arith.maximumf %329, %330 : vector<8x128xf32>
    %c96 = arith.constant 96 : index
    %c0_67 = arith.constant 0 : index
    %332 = vector.load %arg3[%c96, %c0_67] : memref<480x128xf32, #tpu.memory_space<vmem>>, vector<128x128xf32>
    %c224 = arith.constant 224 : index
    %c0_68 = arith.constant 0 : index
    %333 = vector.load %arg3[%c224, %c0_68] : memref<480x128xf32, #tpu.memory_space<vmem>>, vector<128x128xf32>
    %c2 = arith.constant 2 : index
    %c0_69 = arith.constant 0 : index
    %334 = vector.load %arg4[%c2, %c0_69] : memref<8x128xf32, #tpu.memory_space<vmem>>, vector<1x128xf32>
    %cst_70 = arith.constant dense<0.000000e+00> : vector<8x128xf32>
    %335 = tpu.matmul %324, %332, %cst_70 {dimension_numbers = #tpu.dot_dimension_numbers<[1], [0], [0], [1], [0, 0, 1, 1], [], []>} : vector<8x128xf32>, vector<128x128xf32>, vector<8x128xf32> -> vector<8x128xf32>
    %cst_71 = arith.constant dense<0.000000e+00> : vector<8x128xf32>
    %336 = tpu.matmul %331, %333, %cst_71 {dimension_numbers = #tpu.dot_dimension_numbers<[1], [0], [0], [1], [0, 0, 1, 1], [], []>} : vector<8x128xf32>, vector<128x128xf32>, vector<8x128xf32> -> vector<8x128xf32>
    %337 = arith.addf %335, %336 : vector<8x128xf32>
    %338 = vector.broadcast %334 : vector<1x128xf32> to vector<8x128xf32>
    %339 = arith.addf %337, %338 : vector<8x128xf32>
    %cst_72 = arith.constant 0.000000e+00 : f32
    %340 = vector.broadcast %cst_72 : f32 to vector<8x128xf32>
    %341 = arith.maximumf %339, %340 : vector<8x128xf32>
    %c352 = arith.constant 352 : index
    %c0_73 = arith.constant 0 : index
    %342 = vector.load %arg3[%c352, %c0_73] : memref<480x128xf32, #tpu.memory_space<vmem>>, vector<128x128xf32>
    %cst_74 = arith.constant dense<0.000000e+00> : vector<8x128xf32>
    %343 = tpu.matmul %341, %342, %cst_74 {dimension_numbers = #tpu.dot_dimension_numbers<[1], [0], [0], [1], [0, 0, 1, 1], [], []>} : vector<8x128xf32>, vector<128x128xf32>, vector<8x128xf32> -> vector<8x128xf32>
    %c3 = arith.constant 3 : index
    %c0_75 = arith.constant 0 : index
    %344 = vector.load %arg4[%c3, %c0_75] : memref<8x128xf32, #tpu.memory_space<vmem>>, vector<1x128xf32>
    %345 = vector.broadcast %344 : vector<1x128xf32> to vector<8x128xf32>
    %346 = arith.addf %343, %345 : vector<8x128xf32>
    %c0_76 = arith.constant 0 : index
    %c0_77 = arith.constant 0 : index
    %347 = vector.load %arg5[%c0_76, %c0_77] : memref<8x128xf32, #tpu.memory_space<vmem>>, vector<8x128xf32>
    tpu.vector_store %arg5[%c0_76, %c0_77], %346 {strides = array<i32>} : memref<8x128xf32, #tpu.memory_space<vmem>>, vector<8x128xf32>,
    return
  }
}

</mosaic_0001>

<bundles_post_ra>
// kernel: tpu_custom_call.1
= control target key start
LH: loop header
LB: loop body
LE: loop exit
PB: predicated region body
PF: predicated region fallthrough
CT: control target
= control target key end

     0   :  { %10 = vsyncpa [#allocation4], 0  ;;  %s2284_s0 = inlined_call_operand.hbm [shape: f32[64,128], index: 0, kind: input, shape index: {}]   ;;  %s2285_s1 = inlined_call_operand.hbm [shape: f32[128,128], index: 1, kind: input, shape index: {}]   ;;  %s2286_s2 = inlined_call_operand.hbm [shape: f32[64,256], index: 2, kind: input, shape index: {}]   ;;  %s2287_s3 = inlined_call_operand.hbm [shape: f32[480,128], index: 3, kind: input, shape index: {}]   ;;  %s2288_s4 = inlined_call_operand.hbm [shape: f32[8,128], index: 4, kind: input, shape index: {}]   ;;  %s2289_s5 = inlined_call_operand.hbm [shape: f32[8,128], index: 5, kind: output, shape index: {}]  }
   0x1   :  { %11 = vsyncpa [#allocation7], 0 }
   0x2   :  { %12 = vsyncpa [#allocation10], 0 }
   0x3   :  { %13 = vsyncpa [#allocation5], 0  ;;  %s31_s20 = sshll.u32 %s2285_s1, 4  ;;  %s1944_s21 = smov [#allocation6]   ;;  %s32_s20 = int_to_ptr.hbm [resolvable:$true] %s31_s20 }
   0x4   :  { %s33_s22 = sshll.u32 %s1944_s21, 4  ;;  %s57_s25 = sshll.u32 %s2287_s3, 4  ;;  %s34_s22 = int_to_ptr.vmem [resolvable:$true] %s33_s22  ;;  %s58_s25 = int_to_ptr.hbm [resolvable:$true] %s57_s25 }
   0x5   :  { %s1945_s26 = smov 128   ;;  %s1946_s27 = smov 8  }
   0x6   :  { %39 = dma.hbm_to_vmem [thread:$0]  %s32_s20, 2048, %s34_s22, [#allocation7], %s1945_s26, %s1945_s26, %s1946_s27  }
   0x7   :  { %s1947_s28 = smov [#allocation9]   ;;  %s18_s7 = sshll.u32 %s2284_s0, 4  ;;  %s19_s7 = int_to_ptr.hbm [resolvable:$true] %s18_s7 }
   0x8   :  { %s59_s29 = sshll.u32 %s1947_s28, 4  ;;  %s44_s9 = sshll.u32 %s2286_s2, 4  ;;  %s60_s29 = int_to_ptr.vmem [resolvable:$true] %s59_s29  ;;  %s45_s9 = int_to_ptr.hbm [resolvable:$true] %s44_s9 }
   0x9   :  { %65 = dma.hbm_to_vmem [thread:$0]  %s58_s25, 7680, %s60_s29, [#allocation10], %s1945_s26, %s1945_s26, %s1946_s27  }
   0xa   :  { %s1948_s10 = smov [#allocation3]   ;;  %s1949_s3 = smov [#allocation8]  }
   0xb   :  { %s20_s11 = sshll.u32 %s1948_s10, 4  ;;  %s46_s12 = sshll.u32 %s1949_s3, 4  ;;  %s21_s11 = int_to_ptr.vmem [resolvable:$true] %s20_s11  ;;  %s47_s12 = int_to_ptr.vmem [resolvable:$true] %s46_s12 }
   0xc   :  { %26 = dma.hbm_to_vmem [thread:$0]  %s19_s7, 1024, %s21_s11, [#allocation4], %s1945_s26, %s1945_s26, %s1946_s27  }
   0xd   :  { %s1950_s13 = smov 256   ;;  %s1951_s14 = smov 16  }
   0xe   :  { %52 = dma.hbm_to_vmem [thread:$0]  %s45_s9, 2048, %s47_s12, [#allocation7], %s1950_s13, %s1950_s13, %s1951_s14  }
   0xf   :  { %s71_s16 = sshll.u32 %s2288_s4, 4  ;;  %s1952_s17 = smov [#allocation11]   ;;  %s72_s16 = int_to_ptr.hbm [resolvable:$true] %s71_s16 }
  0x10   :  { %s73_s18 = sshll.u32 %s1952_s17, 4  ;;  %s74_s18 = int_to_ptr.vmem [resolvable:$true] %s73_s18 }
  0x11   :  { %76 = dma.hbm_to_vmem [thread:$0]  %s72_s16, 128, %s74_s18, [#allocation10]  }
  0x12   :  { %1936 = dma.done.wait [#allocation4], 1024  }
  0x13   :  { %1937 = vsyncadd [#allocation4], 4294966272 }
  0x14   :  { %1938 = dma.done.wait [#allocation7], 4096  }
  0x15   :  { %1939 = vsyncadd [#allocation7], 4294963200 }
  0x16   :  { %1940 = dma.done.wait [#allocation10], 7808  }
  0x17   :  { %1941 = vsyncadd [#allocation10], 4294959488  ;;  %v120_v0 = vld [vmem:[#allocation6 + $0x78] sm:$0xff]  ;;  %v119_v1 = vld [vmem:[#allocation6 + $0x70] sm:$0xff]  ;;  %s1953_s2 = smov 64   ;;  %s1954_s4 = smov 32  }
  0x18   :  { %121 = vmatpush.msra.mxu0 %v120_v0  ;;  %v118_v2 = vld [vmem:[#allocation6 + $0x68] sm:$0xff]  ;;  %v117_v3 = vld [vmem:[#allocation6 + $0x60] sm:$0xff]  ;;  %v116_v4 = vld [vmem:[#allocation6 + $0x58] sm:$0xff]  ;;  %vm225_vm4 = vcmask 261120   ;;  %v1955_v54 = vmov 0.0   ;;  %s1956_s19 = smov [#allocation12]  }
  0x19   :  { %v115_v5 = vld [vmem:[#allocation6 + $0x50] sm:$0xff]  ;;  %v114_v6 = vld [vmem:[#allocation6 + $0x48] sm:$0xff]  ;;  %v113_v7 = vld [vmem:[#allocation6 + $0x40] sm:$0xff]  ;;  %s1589_s20 = sshll.u32 %s1956_s19, 4  ;;  %s1591_s23 = sshll.u32 %s2289_s5, 4  ;;  %s1590_s20 = int_to_ptr.vmem [resolvable:$true] %s1589_s20  ;;  %s1592_s23 = int_to_ptr.hbm [resolvable:$true] %s1591_s23 }
  0x1a   :  { %122 = vmatpush.msra.mxu0 %v119_v1  ;;  %v112_v8 = vld [vmem:[#allocation6 + $0x38] sm:$0xff]  ;;  %v111_v9 = vld [vmem:[#allocation6 + $0x30] sm:$0xff]  ;;  %v110_v10 = vld [vmem:[#allocation6 + $0x28] sm:$0xff] }
  0x1b   :  { %v109_v11 = vld [vmem:[#allocation6 + $0x20] sm:$0xff]  ;;  %v108_v12 = vld [vmem:[#allocation6 + $0x18] sm:$0xff]  ;;  %v107_v13 = vld [vmem:[#allocation6 + $0x10] sm:$0xff] }
  0x1c   :  { %123 = vmatpush.msra.mxu0 %v118_v2  ;;  %v106_v14 = vld [vmem:[#allocation6 + $0x8] sm:$0xff]  ;;  %v105_v15 = vld [vmem:[#allocation6] sm:$0xff]  ;;  %v2008_v38 = vld [vmem:[#allocation8 + $0x30] sm:$0xff] }
  0x1d   :  { %v97_v16 = vld [vmem:[#allocation3] sm:$0xff]  ;;  %240 = vmatpush.msra.mxu1 %v2008_v38  ;;  %v2013_v40 = vld [vmem:[#allocation8 + $0x10] sm:$0xff]  ;;  %v98_v44 = vld [vmem:[#allocation3 + $0x8] sm:$0xff] }
  0x1e   :  { %124 = vmatpush.msra.mxu0 %v117_v3  ;;  %v2010_v39 = vld [vmem:[#allocation8 + $0x20] sm:$0xff]  ;;  %v2021_v45 = vld [vmem:[#allocation8 + $0x38] sm:$0xff]  ;;  %v2023_v46 = vld [vmem:[#allocation8 + $0x28] sm:$0xff] }
  0x1f   :  { %241 = vmatpush.msra.mxu1 %v2010_v39  ;;  %v2016_v41 = vld [vmem:[#allocation8] sm:$0xff]  ;;  %406 = vmatpush.msra.mxu2 %v2021_v45  ;;  %v2027_v47 = vld [vmem:[#allocation8 + $0x18] sm:$0xff]  ;;  %v2031_v48 = vld [vmem:[#allocation8 + $0x8] sm:$0xff] }
  0x20   :  { %125 = vmatpush.msra.mxu0 %v116_v4  ;;  %v2037_v49 = vld [vmem:[#allocation8 + $0x78] sm:$0xff]  ;;  %v2041_v50 = vld [vmem:[#allocation8 + $0x68] sm:$0xff]  ;;  %v2071_v57 = vld [vmem:[#allocation11] ss:$0 sm:$0xff] }
  0x21   :  { %242 = vmatpush.msra.mxu1 %v2013_v40  ;;  %407 = vmatpush.msra.mxu2 %v2023_v46  ;;  %v2045_v51 = vld [vmem:[#allocation8 + $0x58] sm:$0xff]  ;;  %v2049_v52 = vld [vmem:[#allocation8 + $0x48] sm:$0xff] }
  0x22   :  { %126 = vmatpush.msra.mxu0 %v115_v5  ;;  %431 = vmatpush.msra.mxu3 %v2037_v49 }
  0x23   :  { %243 = vmatpush.msra.mxu1 %v2016_v41  ;;  %408 = vmatpush.msra.mxu2 %v2027_v47 }
  0x24   :  { %127 = vmatpush.msra.mxu0 %v114_v6  ;;  %432 = vmatpush.msra.mxu3 %v2041_v50 }
  0x25   :  { %260 = vmatpush.msrb.mxu1 %v2021_v45  ;;  %409 = vmatpush.msra.mxu2 %v2031_v48 }
  0x26   :  { %128 = vmatpush.msra.mxu0 %v113_v7  ;;  %433 = vmatpush.msra.mxu3 %v2045_v51 }
  0x27   :  { %261 = vmatpush.msrb.mxu1 %v2023_v46  ;;  %554 = vmatpush.msrb.mxu2 %v2021_v45 }
  0x28   :  { %129 = vmatpush.msra.mxu0 %v112_v8  ;;  %434 = vmatpush.msra.mxu3 %v2049_v52 }
  0x29   :  { %262 = vmatpush.msrb.mxu1 %v2027_v47  ;;  %555 = vmatpush.msrb.mxu2 %v2023_v46 }
  0x2a   :  { %130 = vmatpush.msra.mxu0 %v111_v9  ;;  %579 = vmatpush.msrb.mxu3 %v2037_v49 }
  0x2b   :  { %263 = vmatpush.msrb.mxu1 %v2031_v48  ;;  %556 = vmatpush.msrb.mxu2 %v2027_v47 }
  0x2c   :  { %131 = vmatpush.msra.mxu0 %v110_v10  ;;  %580 = vmatpush.msrb.mxu3 %v2041_v50 }
  0x2d   :  { %557 = vmatpush.msrb.mxu2 %v2031_v48 }
  0x2e   :  { %132 = vmatpush.msra.mxu0 %v109_v11  ;;  %581 = vmatpush.msrb.mxu3 %v2045_v51 }
  0x30   :  { %133 = vmatpush.msra.mxu0 %v108_v12  ;;  %582 = vmatpush.msrb.mxu3 %v2049_v52 }
  0x32   :  { %134 = vmatpush.msra.mxu0 %v107_v13 }
  0x34   :  { %135 = vmatpush.msra.mxu0 %v106_v14 }
  0x36   :  { %136 = vmatpush.msra.mxu0 %v105_v15 }
  0x37   :  { %137 = vmatmul.f32.vlgmr.msra.gmra.mxu0 %v97_v16 }
  0x3f   :  { %140 = vmatmul.f32.gmra.mxu0 %v98_v44 }
  0xb4   :  { %v138_v17 = vpop.f32.mrf.mxu0 }
  0xb5   :  { %1663 = vtanh.f32 %v138_v17  ;;  %v1603_v19 = vmul.f32 -1.442695, %v138_v17 }
  0xb7   :  { %1665 = vpow2.f32 %v1603_v19 }
  0xbb   :  { %v1664_v18 = vpop.eup %1663 }
  0xbc   :  { %207 = vrot.lane.b32.xlu0 %v1664_v18, %s1953_s2  ;;  %v141_v61 = vpop.f32.mrf.mxu0 }
  0xbd   :  { %v1666_v20 = vpop.eup %1665 }
  0xbe   :  { %v188_v21 = vadd.f32 1.0, %v1666_v20 }
  0xc0   :  { %1667 = vrcp.f32 %v188_v21  ;;  %v200_v27 = vand.u32 2147483648, %v188_v21  ;;  %vm194_vm1 = vweird.f32 %v188_v21  ;;  %v198_v28 = vand.u32 2147483647, %v188_v21 }
  0xc2   :  { %v201_v30 = vor.u32 1.1754944e-38, %v200_v27  ;;  %vm199_vm3 = vcmp.eq.f32.partialorder %v198_v28, 8.507059e+37 }
  0xc6   :  { %v1668_v22 = vpop.eup %1667 }
  0xc7   :  { %v190_v23 = vmul.f32 %v1668_v22, %v188_v21  ;;  %vm195_vm0 = vweird.f32 %v1668_v22 }
  0xc8   :  { %vm196_vm2 = vmor %vm194_vm1, %vm195_vm0 }
  0xc9   :  { %v191_v24 = vsub.f32 1.0, %v190_v23 }
  0xcb   :  { %v192_v25 = vmul.f32 %v1668_v22, %v191_v24 }
  0xcd   :  { %v193_v26 = vadd.f32 %v1668_v22, %v192_v25 }
  0xcf   :  { %v197_v29 = vsel %vm196_vm2, %v1668_v22, %v193_v26 }
  0xd0   :  { %v202_v32 = vsel %vm199_vm3, %v201_v30, %v197_v29 }
  0xd1   :  { %v205_v34 = vmul.f32 0.0, %v202_v32 }
 0x12e   :  { %v208_v31 = vpop.permute.xlu0 %207 }
 0x12f   :  { %v210_v33 = vmul.f32 %v208_v31, %v202_v32 }
 0x131   :  { %212 = vrot.lane.b32.xlu0 %v210_v33, %s1954_s4 }
 0x1a3   :  { %v213_v35 = vpop.permute.xlu0 %212 }
 0x1a4   :  { %v2004_v36 = vadd.f32 %v213_v35, %v205_v34 }
 0x1a6   :  { %1669 = vtanh.f32 %v2004_v36 }
 0x1ac   :  { %v1670_v37 = vpop.eup %1669 }
 0x1ad   :  { %218 = vrot.lane.b32.xlu1 %v1670_v37, %s1953_s2 }
 0x21f   :  { %v219_v42 = vpop.permute.xlu1 %218 }
 0x220   :  { %v221_v43 = vmul.f32 %v219_v42, %v202_v32 }
 0x222   :  { %223 = vrot.lane.b32.xlu1 %v221_v43, %s1954_s4 }
 0x294   :  { %v224_v53 = vpop.permute.xlu1 %223 }
 0x295   :  { %1604 = vmatmul.msk.f32.vlgmr.msra.gmra.mxu1 %vm225_vm4, %v224_v53 }
 0x296   :  { %283 = vmatpush.msra.mxu1 %v2037_v49 }
 0x298   :  { %284 = vmatpush.msra.mxu1 %v2041_v50 }
 0x29a   :  { %285 = vmatpush.msra.mxu1 %v2045_v51 }
 0x29c   :  { %286 = vmatpush.msra.mxu1 %v2049_v52 }
 0x29d   :  { %1605 = vmatmul.msk.f32.vlgmr.msrb.gmra.mxu1 %vm225_vm4, %v224_v53 }
 0x29e   :  { %386 = vmatpush.msrb.mxu1 %v2008_v38 }
 0x2a0   :  { %387 = vmatpush.msrb.mxu1 %v2010_v39 }
 0x2a2   :  { %388 = vmatpush.msrb.mxu1 %v2013_v40 }
 0x2a4   :  { %389 = vmatpush.msrb.mxu1 %v2016_v41 }
 0x2a5   :  { %287 = vmatmul.f32.vlgmr.msra.gmra.mxu1 %v1955_v54 }
 0x2a6   :  { %534 = vmatpush.msra.mxu1 %v2008_v38 }
 0x2a8   :  { %535 = vmatpush.msra.mxu1 %v2010_v39 }
 0x2aa   :  { %536 = vmatpush.msra.mxu1 %v2013_v40 }
 0x2ac   :  { %537 = vmatpush.msra.mxu1 %v2016_v41 }
 0x312   :  { %v245_v55 = vpop.f32.mrf.mxu1 }
 0x313   :  { %v331_v62 = vadd.f32 %v245_v55, %v141_v61 }
 0x315   :  { %v1607_v2 = vmul.f32 -1.442695, %v331_v62 }
 0x31a   :  { %v265_v56 = vpop.f32.mrf.mxu1 }
 0x322   :  { %v288_v58 = vpop.f32.mrf.mxu1 }
 0x323   :  { %v291_v59 = vadd.f32 %v288_v58, %v265_v56  ;;  %v99_v56 = vld [vmem:[#allocation3 + $0x10] sm:$0xff] }
 0x324   :  { %143 = vmatmul.f32.gmra.mxu0 %v99_v56 }
 0x325   :  { %v292_v60 = vadd.f32 %v2071_v57, %v291_v59 }
 0x327   :  { %1671 = vtanh.f32 %v292_v60  ;;  %v1606_v1 = vmul.f32 -1.442695, %v292_v60 }
 0x328   :  { %1673 = vtanh.f32 %v331_v62 }
 0x329   :  { %1675 = vpow2.f32 %v1606_v1 }
 0x32a   :  { %1677 = vpow2.f32 %v1607_v2 }
 0x32d   :  { %v1672_v63 = vpop.eup %1671 }
 0x32e   :  { %315 = vrot.lane.b32.xlu2 %v1672_v63, %s1953_s2  ;;  %v1674_v0 = vpop.eup %1673 }
 0x32f   :  { %v1676_v3 = vpop.eup %1675 }
 0x330   :  { %v296_v4 = vadd.f32 1.0, %v1676_v3  ;;  %v1678_v5 = vpop.eup %1677 }
 0x331   :  { %v335_v6 = vadd.f32 1.0, %v1678_v5 }
 0x332   :  { %1679 = vrcp.f32 %v296_v4  ;;  %v308_v15 = vand.u32 2147483648, %v296_v4  ;;  %vm302_vm6 = vweird.f32 %v296_v4  ;;  %v306_v16 = vand.u32 2147483647, %v296_v4 }
 0x333   :  { %1681 = vrcp.f32 %v335_v6  ;;  %v347_v24 = vand.u32 2147483648, %v335_v6  ;;  %vm341_vm10 = vweird.f32 %v335_v6  ;;  %v345_v25 = vand.u32 2147483647, %v335_v6 }
 0x334   :  { %v309_v19 = vor.u32 1.1754944e-38, %v308_v15  ;;  %vm307_vm8 = vcmp.eq.f32.partialorder %v306_v16, 8.507059e+37 }
 0x335   :  { %v348_v27 = vor.u32 1.1754944e-38, %v347_v24  ;;  %vm346_vm12 = vcmp.eq.f32.partialorder %v345_v25, 8.507059e+37 }
 0x336   :  { %354 = vrot.lane.b32.xlu2 %v1674_v0, %s1953_s2 }
 0x338   :  { %v1680_v7 = vpop.eup %1679 }
 0x339   :  { %v298_v8 = vmul.f32 %v1680_v7, %v296_v4  ;;  %v1682_v10 = vpop.eup %1681  ;;  %vm303_vm5 = vweird.f32 %v1680_v7 }
 0x33a   :  { %v337_v12 = vmul.f32 %v1682_v10, %v335_v6  ;;  %vm304_vm7 = vmor %vm302_vm6, %vm303_vm5  ;;  %vm342_vm9 = vweird.f32 %v1682_v10 }
 0x33b   :  { %v299_v9 = vsub.f32 1.0, %v298_v8  ;;  %vm343_vm11 = vmor %vm341_vm10, %vm342_vm9 }
 0x33c   :  { %v338_v14 = vsub.f32 1.0, %v337_v12 }
 0x33d   :  { %v300_v11 = vmul.f32 %v1680_v7, %v299_v9 }
 0x33e   :  { %v339_v18 = vmul.f32 %v1682_v10, %v338_v14 }
 0x33f   :  { %v301_v13 = vadd.f32 %v1680_v7, %v300_v11 }
 0x340   :  { %v340_v23 = vadd.f32 %v1682_v10, %v339_v18 }
 0x341   :  { %v305_v17 = vsel %vm304_vm7, %v1680_v7, %v301_v13 }
 0x342   :  { %v310_v21 = vsel %vm307_vm8, %v309_v19, %v305_v17  ;;  %v344_v26 = vsel %vm343_vm11, %v1682_v10, %v340_v23 }
 0x343   :  { %v349_v29 = vsel %vm346_vm12, %v348_v27, %v344_v26  ;;  %v313_v31 = vmul.f32 0.0, %v310_v21 }
 0x344   :  { %v352_v34 = vmul.f32 %v349_v29, %v2004_v36 }
 0x388   :  { %v316_v20 = vpop.permute.xlu2 %315 }
 0x389   :  { %v318_v22 = vmul.f32 %v316_v20, %v310_v21 }
 0x38b   :  { %320 = vrot.lane.b32.xlu0 %v318_v22, %s1954_s4 }
 0x390   :  { %v355_v28 = vpop.permute.xlu2 %354 }
 0x391   :  { %v357_v30 = vmul.f32 %v355_v28, %v349_v29 }
 0x393   :  { %359 = vrot.lane.b32.xlu1 %v357_v30, %s1954_s4 }
 0x3a1   :  { %v144_v59 = vpop.f32.mrf.mxu0 }
 0x3fd   :  { %v321_v32 = vpop.permute.xlu0 %320 }
 0x3fe   :  { %v2078_v33 = vadd.f32 %v321_v32, %v313_v31 }
 0x400   :  { %1683 = vtanh.f32 %v2078_v33 }
 0x405   :  { %v360_v35 = vpop.permute.xlu1 %359 }
 0x406   :  { %v1684_v37 = vpop.eup %1683  ;;  %v2082_v42 = vadd.f32 %v360_v35, %v352_v34 }
 0x407   :  { %326 = vrot.lane.b32.xlu2 %v1684_v37, %s1953_s2 }
 0x408   :  { %1685 = vtanh.f32 %v2082_v42 }
 0x40e   :  { %v1686_v43 = vpop.eup %1685 }
 0x40f   :  { %365 = vrot.lane.b32.xlu0 %v1686_v43, %s1953_s2 }
 0x461   :  { %v327_v44 = vpop.permute.xlu2 %326 }
 0x462   :  { %v329_v53 = vmul.f32 %v327_v44, %v310_v21 }
 0x464   :  { %415 = vrot.lane.b32.xlu2 %v329_v53, %s1954_s4 }
 0x481   :  { %v366_v54 = vpop.permute.xlu0 %365 }
 0x482   :  { %v368_v55 = vmul.f32 %v366_v54, %v349_v29 }
 0x484   :  { %370 = vrot.lane.b32.xlu1 %v368_v55, %s1954_s4 }
 0x4be   :  { %v416_v36 = vpop.permute.xlu2 %415 }
 0x4bf   :  { %1610 = vmatmul.msk.f32.vlgmr.msra.gmra.mxu3 %vm225_vm4, %v416_v36 }
 0x4c0   :  { %727 = vmatpush.msra.mxu3 %v2037_v49 }
 0x4c2   :  { %728 = vmatpush.msra.mxu3 %v2041_v50 }
 0x4c4   :  { %729 = vmatpush.msra.mxu3 %v2045_v51 }
 0x4c6   :  { %730 = vmatpush.msra.mxu3 %v2049_v52 }
 0x4f6   :  { %v371_v58 = vpop.permute.xlu1 %370 }
 0x4f7   :  { %1608 = vmatmul.msk.f32.vlgmr.msrb.gmra.mxu1 %vm225_vm4, %v371_v58  ;;  %1609 = vmatmul.msk.f32.vlgmr.msra.gmra.mxu2 %vm225_vm4, %v371_v58 }
 0x4f8   :  { %682 = vmatpush.msrb.mxu1 %v2008_v38  ;;  %702 = vmatpush.msra.mxu2 %v2021_v45 }
 0x4fa   :  { %683 = vmatpush.msrb.mxu1 %v2010_v39  ;;  %703 = vmatpush.msra.mxu2 %v2023_v46 }
 0x4fc   :  { %684 = vmatpush.msrb.mxu1 %v2013_v40  ;;  %704 = vmatpush.msra.mxu2 %v2027_v47 }
 0x4fe   :  { %685 = vmatpush.msrb.mxu1 %v2016_v41  ;;  %705 = vmatpush.msra.mxu2 %v2031_v48 }
 0x542   :  { %v436_v62 = vpop.f32.mrf.mxu3 }
 0x574   :  { %v391_v60 = vpop.f32.mrf.mxu1 }
 0x575   :  { %v479_v61 = vadd.f32 %v391_v60, %v144_v59  ;;  %v100_v60 = vld [vmem:[#allocation3 + $0x18] sm:$0xff] }
 0x576   :  { %146 = vmatmul.f32.gmra.mxu0 %v100_v60 }
 0x577   :  { %1687 = vtanh.f32 %v479_v61  ;;  %v1612_v4 = vmul.f32 -1.442695, %v479_v61 }
 0x57a   :  { %v411_v63 = vpop.f32.mrf.mxu2 }
 0x57b   :  { %v439_v0 = vadd.f32 %v436_v62, %v411_v63 }
 0x57d   :  { %v1688_v1 = vpop.eup %1687  ;;  %v440_v2 = vadd.f32 %v2071_v57, %v439_v0 }
 0x57e   :  { %502 = vrot.lane.b32.xlu1 %v1688_v1, %s1953_s2 }
 0x57f   :  { %1689 = vtanh.f32 %v440_v2  ;;  %v1611_v5 = vmul.f32 -1.442695, %v440_v2 }
 0x580   :  { %1691 = vpow2.f32 %v1612_v4 }
 0x581   :  { %1693 = vpow2.f32 %v1611_v5 }
 0x585   :  { %v1690_v3 = vpop.eup %1689 }
 0x586   :  { %463 = vrot.lane.b32.xlu0 %v1690_v3, %s1953_s2  ;;  %v1692_v6 = vpop.eup %1691 }
 0x587   :  { %v483_v7 = vadd.f32 1.0, %v1692_v6  ;;  %v1694_v8 = vpop.eup %1693 }
 0x588   :  { %v444_v9 = vadd.f32 1.0, %v1694_v8 }
 0x589   :  { %1695 = vrcp.f32 %v483_v7  ;;  %v495_v18 = vand.u32 2147483648, %v483_v7  ;;  %vm489_vm14 = vweird.f32 %v483_v7  ;;  %v493_v19 = vand.u32 2147483647, %v483_v7 }
 0x58a   :  { %1697 = vrcp.f32 %v444_v9  ;;  %v456_v27 = vand.u32 2147483648, %v444_v9  ;;  %vm450_vm2 = vweird.f32 %v444_v9  ;;  %v454_v28 = vand.u32 2147483647, %v444_v9 }
 0x58b   :  { %v496_v22 = vor.u32 1.1754944e-38, %v495_v18  ;;  %vm494_vm0 = vcmp.eq.f32.partialorder %v493_v19, 8.507059e+37 }
 0x58c   :  { %v457_v30 = vor.u32 1.1754944e-38, %v456_v27  ;;  %vm455_vm5 = vcmp.eq.f32.partialorder %v454_v28, 8.507059e+37 }
 0x58f   :  { %v1696_v10 = vpop.eup %1695 }
 0x590   :  { %v485_v11 = vmul.f32 %v1696_v10, %v483_v7  ;;  %v1698_v13 = vpop.eup %1697  ;;  %vm490_vm13 = vweird.f32 %v1696_v10 }
 0x591   :  { %v446_v15 = vmul.f32 %v1698_v13, %v444_v9  ;;  %vm491_vm15 = vmor %vm489_vm14, %vm490_vm13  ;;  %vm451_vm1 = vweird.f32 %v1698_v13 }
 0x592   :  { %v486_v12 = vsub.f32 1.0, %v485_v11  ;;  %vm452_vm3 = vmor %vm450_vm2, %vm451_vm1 }
 0x593   :  { %v447_v17 = vsub.f32 1.0, %v446_v15 }
 0x594   :  { %v487_v14 = vmul.f32 %v1696_v10, %v486_v12 }
 0x595   :  { %v448_v21 = vmul.f32 %v1698_v13, %v447_v17 }
 0x596   :  { %v488_v16 = vadd.f32 %v1696_v10, %v487_v14 }
 0x597   :  { %v449_v26 = vadd.f32 %v1698_v13, %v448_v21 }
 0x598   :  { %v492_v20 = vsel %vm491_vm15, %v1696_v10, %v488_v16 }
 0x599   :  { %v497_v24 = vsel %vm494_vm0, %v496_v22, %v492_v20  ;;  %v453_v29 = vsel %vm452_vm3, %v1698_v13, %v449_v26 }
 0x59a   :  { %v458_v32 = vsel %vm455_vm5, %v457_v30, %v453_v29  ;;  %v500_v53 = vmul.f32 %v497_v24, %v2082_v42 }
 0x59b   :  { %v461_v35 = vmul.f32 %v458_v32, %v2078_v33 }
 0x5f0   :  { %v503_v23 = vpop.permute.xlu1 %502 }
 0x5f1   :  { %v505_v25 = vmul.f32 %v503_v23, %v497_v24 }
 0x5f3   :  { %507 = vrot.lane.b32.xlu0 %v505_v25, %s1954_s4  ;;  %v147_v62 = vpop.f32.mrf.mxu0 }
 0x5f8   :  { %v464_v31 = vpop.permute.xlu0 %463 }
 0x5f9   :  { %v466_v34 = vmul.f32 %v464_v31, %v458_v32 }
 0x5fb   :  { %468 = vrot.lane.b32.xlu2 %v466_v34, %s1954_s4 }
 0x655   :  { %v469_v37 = vpop.permute.xlu2 %468 }
 0x656   :  { %v2110_v43 = vadd.f32 %v469_v37, %v461_v35 }
 0x658   :  { %1699 = vtanh.f32 %v2110_v43 }
 0x65e   :  { %v1700_v44 = vpop.eup %1699 }
 0x65f   :  { %474 = vrot.lane.b32.xlu1 %v1700_v44, %s1953_s2 }
 0x665   :  { %v508_v54 = vpop.permute.xlu0 %507 }
 0x666   :  { %v2115_v55 = vadd.f32 %v508_v54, %v500_v53 }
 0x668   :  { %1701 = vtanh.f32 %v2115_v55 }
 0x66e   :  { %v1702_v36 = vpop.eup %1701 }
 0x66f   :  { %513 = vrot.lane.b32.xlu2 %v1702_v36, %s1953_s2 }
 0x6c9   :  { %v514_v56 = vpop.permute.xlu2 %513 }
 0x6ca   :  { %v516_v33 = vmul.f32 %v514_v56, %v497_v24 }
 0x6cc   :  { %518 = vrot.lane.b32.xlu0 %v516_v33, %s1954_s4 }
 0x6d1   :  { %v475_v58 = vpop.permute.xlu1 %474 }
 0x6d2   :  { %v477_v59 = vmul.f32 %v475_v58, %v458_v32 }
 0x6d4   :  { %563 = vrot.lane.b32.xlu1 %v477_v59, %s1954_s4 }
 0x73e   :  { %v519_v61 = vpop.permute.xlu0 %518 }
 0x73f   :  { %1613 = vmatmul.msk.f32.vlgmr.msra.gmra.mxu1 %vm225_vm4, %v519_v61  ;;  %1614 = vmatmul.msk.f32.vlgmr.msrb.gmra.mxu2 %vm225_vm4, %v519_v61 }
 0x740   :  { %830 = vmatpush.msra.mxu1 %v2008_v38  ;;  %850 = vmatpush.msrb.mxu2 %v2021_v45 }
 0x742   :  { %831 = vmatpush.msra.mxu1 %v2010_v39  ;;  %851 = vmatpush.msrb.mxu2 %v2023_v46 }
 0x744   :  { %832 = vmatpush.msra.mxu1 %v2013_v40  ;;  %852 = vmatpush.msrb.mxu2 %v2027_v47 }
 0x746   :  { %v564_v42 = vpop.permute.xlu1 %563  ;;  %833 = vmatpush.msra.mxu1 %v2016_v41  ;;  %853 = vmatpush.msrb.mxu2 %v2031_v48 }
 0x747   :  { %1615 = vmatmul.msk.f32.vlgmr.msrb.gmra.mxu3 %vm225_vm4, %v564_v42 }
 0x748   :  { %875 = vmatpush.msrb.mxu3 %v2037_v49 }
 0x74a   :  { %876 = vmatpush.msrb.mxu3 %v2041_v50 }
 0x74c   :  { %877 = vmatpush.msrb.mxu3 %v2045_v51 }
 0x74e   :  { %878 = vmatpush.msrb.mxu3 %v2049_v52 }
 0x7bc   :  { %v539_v63 = vpop.f32.mrf.mxu1 }
 0x7bd   :  { %v627_v0 = vadd.f32 %v539_v63, %v147_v62  ;;  %v101_v63 = vld [vmem:[#allocation3 + $0x20] sm:$0xff] }
 0x7be   :  { %149 = vmatmul.f32.gmra.mxu0 %v101_v63 }
 0x7bf   :  { %1703 = vtanh.f32 %v627_v0  ;;  %v1617_v8 = vmul.f32 -1.442695, %v627_v0 }
 0x7c2   :  { %v559_v2 = vpop.f32.mrf.mxu2 }
 0x7c5   :  { %v1704_v1 = vpop.eup %1703 }
 0x7c6   :  { %650 = vrot.lane.b32.xlu0 %v1704_v1, %s1953_s2 }
 0x7ca   :  { %v584_v3 = vpop.f32.mrf.mxu3 }
 0x7cb   :  { %v587_v4 = vadd.f32 %v584_v3, %v559_v2 }
 0x7cd   :  { %v588_v5 = vadd.f32 %v2071_v57, %v587_v4 }
 0x7cf   :  { %1705 = vtanh.f32 %v588_v5  ;;  %v1616_v7 = vmul.f32 -1.442695, %v588_v5 }
 0x7d1   :  { %1707 = vpow2.f32 %v1616_v7 }
 0x7d2   :  { %1709 = vpow2.f32 %v1617_v8 }
 0x7d5   :  { %v1706_v6 = vpop.eup %1705 }
 0x7d6   :  { %611 = vrot.lane.b32.xlu2 %v1706_v6, %s1953_s2 }
 0x7d7   :  { %v1708_v9 = vpop.eup %1707 }
 0x7d8   :  { %v592_v10 = vadd.f32 1.0, %v1708_v9  ;;  %v1710_v11 = vpop.eup %1709 }
 0x7d9   :  { %v631_v12 = vadd.f32 1.0, %v1710_v11 }
 0x7da   :  { %1711 = vrcp.f32 %v592_v10  ;;  %v604_v21 = vand.u32 2147483648, %v592_v10  ;;  %vm598_vm7 = vweird.f32 %v592_v10  ;;  %v602_v22 = vand.u32 2147483647, %v592_v10 }
 0x7db   :  { %1713 = vrcp.f32 %v631_v12  ;;  %v643_v30 = vand.u32 2147483648, %v631_v12  ;;  %vm637_vm11 = vweird.f32 %v631_v12  ;;  %v641_v31 = vand.u32 2147483647, %v631_v12 }
 0x7dc   :  { %v605_v25 = vor.u32 1.1754944e-38, %v604_v21  ;;  %vm603_vm9 = vcmp.eq.f32.partialorder %v602_v22, 8.507059e+37 }
 0x7dd   :  { %v644_v34 = vor.u32 1.1754944e-38, %v643_v30  ;;  %vm642_vm13 = vcmp.eq.f32.partialorder %v641_v31, 8.507059e+37 }
 0x7e0   :  { %v1712_v13 = vpop.eup %1711 }
 0x7e1   :  { %v594_v14 = vmul.f32 %v1712_v13, %v592_v10  ;;  %v1714_v16 = vpop.eup %1713  ;;  %vm599_vm6 = vweird.f32 %v1712_v13 }
 0x7e2   :  { %v633_v18 = vmul.f32 %v1714_v16, %v631_v12  ;;  %vm600_vm8 = vmor %vm598_vm7, %vm599_vm6  ;;  %vm638_vm10 = vweird.f32 %v1714_v16 }
 0x7e3   :  { %v595_v15 = vsub.f32 1.0, %v594_v14  ;;  %vm639_vm12 = vmor %vm637_vm11, %vm638_vm10 }
 0x7e4   :  { %v634_v20 = vsub.f32 1.0, %v633_v18 }
 0x7e5   :  { %v596_v17 = vmul.f32 %v1712_v13, %v595_v15 }
 0x7e6   :  { %v635_v24 = vmul.f32 %v1714_v16, %v634_v20 }
 0x7e7   :  { %v597_v19 = vadd.f32 %v1712_v13, %v596_v17 }
 0x7e8   :  { %v636_v29 = vadd.f32 %v1714_v16, %v635_v24 }
 0x7e9   :  { %v601_v23 = vsel %vm600_vm8, %v1712_v13, %v597_v19 }
 0x7ea   :  { %v606_v27 = vsel %vm603_vm9, %v605_v25, %v601_v23  ;;  %v640_v32 = vsel %vm639_vm12, %v1714_v16, %v636_v29 }
 0x7eb   :  { %v645_v37 = vsel %vm642_vm13, %v644_v34, %v640_v32  ;;  %v609_v33 = vmul.f32 %v606_v27, %v2110_v43 }
 0x7ec   :  { %v648_v53 = vmul.f32 %v645_v37, %v2115_v55 }
 0x830   :  { %v612_v26 = vpop.permute.xlu2 %611 }
 0x831   :  { %v614_v28 = vmul.f32 %v612_v26, %v606_v27 }
 0x833   :  { %616 = vrot.lane.b32.xlu1 %v614_v28, %s1954_s4 }
 0x838   :  { %v651_v35 = vpop.permute.xlu0 %650 }
 0x839   :  { %v653_v44 = vmul.f32 %v651_v35, %v645_v37 }
 0x83b   :  { %655 = vrot.lane.b32.xlu2 %v653_v44, %s1954_s4  ;;  %v150_v1 = vpop.f32.mrf.mxu0 }
 0x895   :  { %v656_v54 = vpop.permute.xlu2 %655 }
 0x896   :  { %v2142_v36 = vadd.f32 %v656_v54, %v648_v53 }
 0x898   :  { %1715 = vtanh.f32 %v2142_v36 }
 0x89e   :  { %v1716_v56 = vpop.eup %1715 }
 0x89f   :  { %661 = vrot.lane.b32.xlu1 %v1716_v56, %s1953_s2 }
 0x8a5   :  { %v617_v58 = vpop.permute.xlu1 %616 }
 0x8a6   :  { %v2147_v59 = vadd.f32 %v617_v58, %v609_v33 }
 0x8a8   :  { %1717 = vtanh.f32 %v2147_v59 }
 0x8ae   :  { %v1718_v60 = vpop.eup %1717 }
 0x8af   :  { %622 = vrot.lane.b32.xlu0 %v1718_v60, %s1953_s2 }
 0x911   :  { %v662_v61 = vpop.permute.xlu1 %661 }
 0x912   :  { %v664_v55 = vmul.f32 %v662_v61, %v645_v37 }
 0x914   :  { %666 = vrot.lane.b32.xlu2 %v664_v55, %s1954_s4 }
 0x921   :  { %v623_v42 = vpop.permute.xlu0 %622 }
 0x922   :  { %v625_v62 = vmul.f32 %v623_v42, %v606_v27 }
 0x924   :  { %711 = vrot.lane.b32.xlu0 %v625_v62, %s1954_s4 }
 0x96e   :  { %v667_v0 = vpop.permute.xlu2 %666 }
 0x96f   :  { %1618 = vmatmul.msk.f32.vlgmr.msrb.gmra.mxu1 %vm225_vm4, %v667_v0  ;;  %1619 = vmatmul.msk.f32.vlgmr.msra.gmra.mxu2 %vm225_vm4, %v667_v0 }
 0x970   :  { %978 = vmatpush.msrb.mxu1 %v2008_v38  ;;  %998 = vmatpush.msra.mxu2 %v2021_v45 }
 0x972   :  { %979 = vmatpush.msrb.mxu1 %v2010_v39  ;;  %999 = vmatpush.msra.mxu2 %v2023_v46 }
 0x974   :  { %980 = vmatpush.msrb.mxu1 %v2013_v40  ;;  %1000 = vmatpush.msra.mxu2 %v2027_v47 }
 0x976   :  { %981 = vmatpush.msrb.mxu1 %v2016_v41  ;;  %1001 = vmatpush.msra.mxu2 %v2031_v48 }
 0x996   :  { %v712_v43 = vpop.permute.xlu0 %711 }
 0x997   :  { %1620 = vmatmul.msk.f32.vlgmr.msra.gmra.mxu3 %vm225_vm4, %v712_v43 }
 0x998   :  { %1023 = vmatpush.msra.mxu3 %v2037_v49 }
 0x99a   :  { %1024 = vmatpush.msra.mxu3 %v2041_v50 }
 0x99c   :  { %1025 = vmatpush.msra.mxu3 %v2045_v51 }
 0x99e   :  { %1026 = vmatpush.msra.mxu3 %v2049_v52 }
 0x9ec   :  { %v687_v2 = vpop.f32.mrf.mxu1 }
 0x9ed   :  { %v775_v3 = vadd.f32 %v687_v2, %v150_v1  ;;  %v102_v2 = vld [vmem:[#allocation3 + $0x28] sm:$0xff] }
 0x9ee   :  { %152 = vmatmul.f32.gmra.mxu0 %v102_v2 }
 0x9ef   :  { %1719 = vtanh.f32 %v775_v3  ;;  %v1622_v9 = vmul.f32 -1.442695, %v775_v3 }
 0x9f2   :  { %v707_v5 = vpop.f32.mrf.mxu2 }
 0x9f5   :  { %v1720_v4 = vpop.eup %1719 }
 0x9f6   :  { %798 = vrot.lane.b32.xlu2 %v1720_v4, %s1953_s2 }
 0xa1a   :  { %v732_v6 = vpop.f32.mrf.mxu3 }
 0xa1b   :  { %v735_v7 = vadd.f32 %v732_v6, %v707_v5 }
 0xa1d   :  { %v736_v8 = vadd.f32 %v2071_v57, %v735_v7 }
 0xa1f   :  { %1721 = vtanh.f32 %v736_v8  ;;  %v1621_v25 = vmul.f32 -1.442695, %v736_v8 }
 0xa20   :  { %1723 = vpow2.f32 %v1622_v9 }
 0xa25   :  { %v1722_v10 = vpop.eup %1721 }
 0xa26   :  { %759 = vrot.lane.b32.xlu1 %v1722_v10, %s1953_s2  ;;  %v1724_v11 = vpop.eup %1723 }
 0xa27   :  { %v779_v12 = vadd.f32 1.0, %v1724_v11 }
 0xa29   :  { %1725 = vrcp.f32 %v779_v12  ;;  %v791_v18 = vand.u32 2147483648, %v779_v12  ;;  %vm785_vm15 = vweird.f32 %v779_v12  ;;  %v789_v19 = vand.u32 2147483647, %v779_v12 }
 0xa2a   :  { %1727 = vpow2.f32 %v1621_v25 }
 0xa2b   :  { %v792_v21 = vor.u32 1.1754944e-38, %v791_v18  ;;  %vm790_vm1 = vcmp.eq.f32.partialorder %v789_v19, 8.507059e+37 }
 0xa2f   :  { %v1726_v13 = vpop.eup %1725 }
 0xa30   :  { %v781_v14 = vmul.f32 %v1726_v13, %v779_v12  ;;  %vm786_vm14 = vweird.f32 %v1726_v13  ;;  %v1728_v26 = vpop.eup %1727 }
 0xa31   :  { %vm787_vm0 = vmor %vm785_vm15, %vm786_vm14  ;;  %v740_v27 = vadd.f32 1.0, %v1728_v26 }
 0xa32   :  { %v782_v15 = vsub.f32 1.0, %v781_v14 }
 0xa33   :  { %1729 = vrcp.f32 %v740_v27  ;;  %v752_v34 = vand.u32 2147483648, %v740_v27  ;;  %vm746_vm3 = vweird.f32 %v740_v27  ;;  %v750_v35 = vand.u32 2147483647, %v740_v27 }
 0xa34   :  { %v783_v16 = vmul.f32 %v1726_v13, %v782_v15 }
 0xa35   :  { %v753_v44 = vor.u32 1.1754944e-38, %v752_v34  ;;  %vm751_vm6 = vcmp.eq.f32.partialorder %v750_v35, 8.507059e+37 }
 0xa36   :  { %v784_v17 = vadd.f32 %v1726_v13, %v783_v16 }
 0xa38   :  { %v788_v20 = vsel %vm787_vm0, %v1726_v13, %v784_v17 }
 0xa39   :  { %v793_v23 = vsel %vm790_vm1, %v792_v21, %v788_v20  ;;  %v1730_v28 = vpop.eup %1729 }
 0xa3a   :  { %v742_v29 = vmul.f32 %v1730_v28, %v740_v27  ;;  %vm747_vm2 = vweird.f32 %v1730_v28  ;;  %v796_v33 = vmul.f32 %v793_v23, %v2142_v36 }
 0xa3b   :  { %vm748_vm5 = vmor %vm746_vm3, %vm747_vm2 }
 0xa3c   :  { %v743_v30 = vsub.f32 1.0, %v742_v29 }
 0xa3e   :  { %v744_v31 = vmul.f32 %v1730_v28, %v743_v30 }
 0xa40   :  { %v745_v32 = vadd.f32 %v1730_v28, %v744_v31 }
 0xa42   :  { %v749_v37 = vsel %vm748_vm5, %v1730_v28, %v745_v32 }
 0xa43   :  { %v754_v54 = vsel %vm751_vm6, %v753_v44, %v749_v37 }
 0xa44   :  { %v757_v55 = vmul.f32 %v754_v54, %v2147_v59 }
 0xa50   :  { %v799_v22 = vpop.permute.xlu2 %798 }
 0xa51   :  { %v801_v24 = vmul.f32 %v799_v22, %v793_v23 }
 0xa53   :  { %803 = vrot.lane.b32.xlu1 %v801_v24, %s1954_s4 }
 0xa98   :  { %v760_v53 = vpop.permute.xlu1 %759 }
 0xa99   :  { %v762_v56 = vmul.f32 %v760_v53, %v754_v54 }
 0xa9b   :  { %764 = vrot.lane.b32.xlu0 %v762_v56, %s1954_s4 }
 0xac5   :  { %v804_v58 = vpop.permute.xlu1 %803 }
 0xac6   :  { %v2174_v60 = vadd.f32 %v804_v58, %v796_v33 }
 0xac8   :  { %1731 = vtanh.f32 %v2174_v60 }
 0xace   :  { %v1732_v61 = vpop.eup %1731 }
 0xacf   :  { %809 = vrot.lane.b32.xlu0 %v1732_v61, %s1953_s2 }
 0xb0d   :  { %v765_v42 = vpop.permute.xlu0 %764 }
 0xb0e   :  { %v2179_v62 = vadd.f32 %v765_v42, %v757_v55 }
 0xb10   :  { %1733 = vtanh.f32 %v2179_v62 }
 0xb16   :  { %v1734_v63 = vpop.eup %1733 }
 0xb17   :  { %770 = vrot.lane.b32.xlu2 %v1734_v63, %s1953_s2 }
 0xb41   :  { %v810_v0 = vpop.permute.xlu0 %809 }
 0xb42   :  { %v812_v36 = vmul.f32 %v810_v0, %v793_v23 }
 0xb44   :  { %814 = vrot.lane.b32.xlu1 %v812_v36, %s1954_s4 }
 0xb71   :  { %v771_v43 = vpop.permute.xlu2 %770 }
 0xb72   :  { %v773_v1 = vmul.f32 %v771_v43, %v754_v54 }
 0xb74   :  { %859 = vrot.lane.b32.xlu2 %v773_v1, %s1954_s4 }
 0xbb6   :  { %v815_v3 = vpop.permute.xlu1 %814 }
 0xbb7   :  { %1623 = vmatmul.msk.f32.vlgmr.msra.gmra.mxu1 %vm225_vm4, %v815_v3  ;;  %1624 = vmatmul.msk.f32.vlgmr.msrb.gmra.mxu2 %vm225_vm4, %v815_v3 }
 0xbb8   :  { %1126 = vmatpush.msra.mxu1 %v2008_v38  ;;  %1146 = vmatpush.msrb.mxu2 %v2021_v45  ;;  %v153_v38 = vpop.f32.mrf.mxu0 }
 0xbba   :  { %1127 = vmatpush.msra.mxu1 %v2010_v39  ;;  %1147 = vmatpush.msrb.mxu2 %v2023_v46 }
 0xbbc   :  { %1128 = vmatpush.msra.mxu1 %v2013_v40  ;;  %1148 = vmatpush.msrb.mxu2 %v2027_v47 }
 0xbbe   :  { %1129 = vmatpush.msra.mxu1 %v2016_v41  ;;  %1149 = vmatpush.msrb.mxu2 %v2031_v48 }
 0xbce   :  { %v860_v59 = vpop.permute.xlu2 %859 }
 0xbcf   :  { %1625 = vmatmul.msk.f32.vlgmr.msrb.gmra.mxu3 %vm225_vm4, %v860_v59 }
 0xbd0   :  { %1171 = vmatpush.msrb.mxu3 %v2037_v49 }
 0xbd2   :  { %1172 = vmatpush.msrb.mxu3 %v2041_v50 }
 0xbd4   :  { %1173 = vmatpush.msrb.mxu3 %v2045_v51 }
 0xbd6   :  { %1174 = vmatpush.msrb.mxu3 %v2049_v52 }
 0xc34   :  { %v835_v39 = vpop.f32.mrf.mxu1 }
 0xc35   :  { %v923_v40 = vadd.f32 %v835_v39, %v153_v38 }
 0xc37   :  { %1735 = vtanh.f32 %v923_v40  ;;  %v1627_v9 = vmul.f32 -1.442695, %v923_v40 }
 0xc3a   :  { %v855_v41 = vpop.f32.mrf.mxu2 }
 0xc3d   :  { %v1736_v4 = vpop.eup %1735 }
 0xc3e   :  { %946 = vrot.lane.b32.xlu1 %v1736_v4, %s1953_s2 }
 0xc52   :  { %v880_v5 = vpop.f32.mrf.mxu3 }
 0xc53   :  { %v883_v6 = vadd.f32 %v880_v5, %v855_v41 }
 0xc55   :  { %v884_v7 = vadd.f32 %v2071_v57, %v883_v6 }
 0xc57   :  { %1737 = vtanh.f32 %v884_v7  ;;  %v1626_v15 = vmul.f32 -1.442695, %v884_v7 }
 0xc58   :  { %1739 = vpow2.f32 %v1627_v9 }
 0xc5d   :  { %v1738_v8 = vpop.eup %1737 }
 0xc5e   :  { %907 = vrot.lane.b32.xlu0 %v1738_v8, %s1953_s2  ;;  %v1740_v10 = vpop.eup %1739 }
 0xc5f   :  { %v927_v11 = vadd.f32 1.0, %v1740_v10 }
 0xc61   :  { %1741 = vrcp.f32 %v927_v11  ;;  %v939_v18 = vand.u32 2147483648, %v927_v11  ;;  %vm933_vm8 = vweird.f32 %v927_v11  ;;  %v937_v19 = vand.u32 2147483647, %v927_v11 }
 0xc62   :  { %1743 = vpow2.f32 %v1626_v15 }
 0xc63   :  { %v940_v22 = vor.u32 1.1754944e-38, %v939_v18  ;;  %vm938_vm10 = vcmp.eq.f32.partialorder %v937_v19, 8.507059e+37 }
 0xc67   :  { %v1742_v12 = vpop.eup %1741 }
 0xc68   :  { %v929_v13 = vmul.f32 %v1742_v12, %v927_v11  ;;  %vm934_vm7 = vweird.f32 %v1742_v12  ;;  %v1744_v20 = vpop.eup %1743 }
 0xc69   :  { %vm935_vm9 = vmor %vm933_vm8, %vm934_vm7  ;;  %v888_v23 = vadd.f32 1.0, %v1744_v20 }
 0xc6a   :  { %v930_v14 = vsub.f32 1.0, %v929_v13 }
 0xc6b   :  { %1745 = vrcp.f32 %v888_v23  ;;  %v900_v32 = vand.u32 2147483648, %v888_v23  ;;  %vm894_vm12 = vweird.f32 %v888_v23  ;;  %v898_v34 = vand.u32 2147483647, %v888_v23 }
 0xc6c   :  { %v931_v16 = vmul.f32 %v1742_v12, %v930_v14 }
 0xc6d   :  { %v901_v37 = vor.u32 1.1754944e-38, %v900_v32  ;;  %vm899_vm14 = vcmp.eq.f32.partialorder %v898_v34, 8.507059e+37 }
 0xc6e   :  { %v932_v17 = vadd.f32 %v1742_v12, %v931_v16 }
 0xc70   :  { %v936_v21 = vsel %vm935_vm9, %v1742_v12, %v932_v17 }
 0xc71   :  { %v941_v25 = vsel %vm938_vm10, %v940_v22, %v936_v21  ;;  %v1746_v27 = vpop.eup %1745 }
 0xc72   :  { %v890_v28 = vmul.f32 %v1746_v27, %v888_v23  ;;  %vm895_vm11 = vweird.f32 %v1746_v27  ;;  %v944_v56 = vmul.f32 %v941_v25, %v2174_v60 }
 0xc73   :  { %vm896_vm13 = vmor %vm894_vm12, %vm895_vm11 }
 0xc74   :  { %v891_v29 = vsub.f32 1.0, %v890_v28 }
 0xc76   :  { %v892_v30 = vmul.f32 %v1746_v27, %v891_v29 }
 0xc78   :  { %v893_v31 = vadd.f32 %v1746_v27, %v892_v30 }
 0xc7a   :  { %v897_v35 = vsel %vm896_vm13, %v1746_v27, %v893_v31 }
 0xc7b   :  { %v902_v53 = vsel %vm899_vm14, %v901_v37, %v897_v35 }
 0xc7c   :  { %v905_v61 = vmul.f32 %v902_v53, %v2179_v62  ;;  %v103_v62 = vld [vmem:[#allocation3 + $0x30] sm:$0xff] }
 0xc7d   :  { %155 = vmatmul.f32.gmra.mxu0 %v103_v62  ;;  %v2252_v62 = vld [vmem:[#allocation11] ss:$0 sm:$0xff] }
 0xcb0   :  { %v947_v24 = vpop.permute.xlu1 %946 }
 0xcb1   :  { %v949_v26 = vmul.f32 %v947_v24, %v941_v25 }
 0xcb3   :  { %951 = vrot.lane.b32.xlu0 %v949_v26, %s1954_s4 }
 0xcd0   :  { %v908_v44 = vpop.permute.xlu0 %907 }
 0xcd1   :  { %v910_v54 = vmul.f32 %v908_v44, %v902_v53 }
 0xcd3   :  { %912 = vrot.lane.b32.xlu2 %v910_v54, %s1954_s4 }
 0xcfa   :  { %v156_v59 = vpop.f32.mrf.mxu0 }
 0xd25   :  { %v952_v33 = vpop.permute.xlu0 %951 }
 0xd26   :  { %v2206_v58 = vadd.f32 %v952_v33, %v944_v56 }
 0xd28   :  { %1747 = vtanh.f32 %v2206_v58 }
 0xd2d   :  { %v913_v55 = vpop.permute.xlu2 %912 }
 0xd2e   :  { %v1748_v42 = vpop.eup %1747  ;;  %v2210_v63 = vadd.f32 %v913_v55, %v905_v61 }
 0xd2f   :  { %957 = vrot.lane.b32.xlu2 %v1748_v42, %s1953_s2 }
 0xd30   :  { %1749 = vtanh.f32 %v2210_v63 }
 0xd36   :  { %v1750_v0 = vpop.eup %1749 }
 0xd37   :  { %918 = vrot.lane.b32.xlu1 %v1750_v0, %s1953_s2 }
 0xd89   :  { %v958_v36 = vpop.permute.xlu2 %957 }
 0xd8a   :  { %v960_v60 = vmul.f32 %v958_v36, %v941_v25 }
 0xd8c   :  { %962 = vrot.lane.b32.xlu0 %v960_v60, %s1954_s4 }
 0xda9   :  { %v919_v43 = vpop.permute.xlu1 %918 }
 0xdaa   :  { %v921_v1 = vmul.f32 %v919_v43, %v902_v53 }
 0xdac   :  { %1007 = vrot.lane.b32.xlu1 %v921_v1, %s1954_s4 }
 0xdfe   :  { %v963_v2 = vpop.permute.xlu0 %962 }
 0xdff   :  { %1628 = vmatmul.msk.f32.vlgmr.msrb.gmra.mxu1 %vm225_vm4, %v963_v2  ;;  %1629 = vmatmul.msk.f32.vlgmr.msra.gmra.mxu2 %vm225_vm4, %v963_v2 }
 0xe00   :  { %1299 = vmatpush.msra.mxu2 %v2021_v45  ;;  %1274 = vmatpush.msrb.mxu1 %v2037_v49 }
 0xe02   :  { %1300 = vmatpush.msra.mxu2 %v2023_v46  ;;  %1275 = vmatpush.msrb.mxu1 %v2041_v50 }
 0xe04   :  { %1301 = vmatpush.msra.mxu2 %v2027_v47  ;;  %1276 = vmatpush.msrb.mxu1 %v2045_v51 }
 0xe06   :  { %1302 = vmatpush.msra.mxu2 %v2031_v48  ;;  %1277 = vmatpush.msrb.mxu1 %v2049_v52 }
 0xe1e   :  { %v1008_v3 = vpop.permute.xlu1 %1007 }
 0xe1f   :  { %1630 = vmatmul.msk.f32.vlgmr.msra.gmra.mxu3 %vm225_vm4, %v1008_v3 }
 0xe7c   :  { %v983_v38 = vpop.f32.mrf.mxu1 }
 0xe7d   :  { %v1071_v45 = vadd.f32 %v983_v38, %v156_v59 }
 0xe7f   :  { %1751 = vtanh.f32 %v1071_v45  ;;  %v1632_v48 = vmul.f32 -1.442695, %v1071_v45 }
 0xe82   :  { %v1003_v46 = vpop.f32.mrf.mxu2 }
 0xe85   :  { %v1752_v49 = vpop.eup %1751 }
 0xe86   :  { %1094 = vrot.lane.b32.xlu0 %v1752_v49, %s1953_s2 }
 0xea2   :  { %v1028_v50 = vpop.f32.mrf.mxu3 }
 0xea3   :  { %v1031_v39 = vadd.f32 %v1028_v50, %v1003_v46 }
 0xea5   :  { %v1032_v47 = vadd.f32 %v2071_v57, %v1031_v39 }
 0xea7   :  { %1753 = vtanh.f32 %v1032_v47  ;;  %v1631_v4 = vmul.f32 -1.442695, %v1032_v47 }
 0xea8   :  { %1755 = vpow2.f32 %v1632_v48 }
 0xead   :  { %v1754_v51 = vpop.eup %1753 }
 0xeae   :  { %1055 = vrot.lane.b32.xlu2 %v1754_v51, %s1953_s2  ;;  %v1756_v52 = vpop.eup %1755 }
 0xeaf   :  { %v1075_v40 = vadd.f32 1.0, %v1756_v52 }
 0xeb1   :  { %1757 = vrcp.f32 %v1075_v40  ;;  %v1087_v11 = vand.u32 2147483648, %v1075_v40  ;;  %vm1081_vm0 = vweird.f32 %v1075_v40  ;;  %v1085_v12 = vand.u32 2147483647, %v1075_v40 }
 0xeb2   :  { %1759 = vpow2.f32 %v1631_v4 }
 0xeb3   :  { %v1088_v15 = vor.u32 1.1754944e-38, %v1087_v11  ;;  %vm1086_vm2 = vcmp.eq.f32.partialorder %v1085_v12, 8.507059e+37 }
 0xeb7   :  { %v1758_v41 = vpop.eup %1757 }
 0xeb8   :  { %v1760_v5 = vpop.eup %1759  ;;  %v1077_v6 = vmul.f32 %v1758_v41, %v1075_v40  ;;  %vm1082_vm15 = vweird.f32 %v1758_v41 }
 0xeb9   :  { %v1036_v7 = vadd.f32 1.0, %v1760_v5  ;;  %vm1083_vm1 = vmor %vm1081_vm0, %vm1082_vm15 }
 0xeba   :  { %v1078_v8 = vsub.f32 1.0, %v1077_v6 }
 0xebb   :  { %1761 = vrcp.f32 %v1036_v7  ;;  %v1048_v22 = vand.u32 2147483648, %v1036_v7  ;;  %vm1042_vm5 = vweird.f32 %v1036_v7  ;;  %v1046_v23 = vand.u32 2147483647, %v1036_v7 }
 0xebc   :  { %v1079_v9 = vmul.f32 %v1758_v41, %v1078_v8 }
 0xebd   :  { %v1049_v25 = vor.u32 1.1754944e-38, %v1048_v22  ;;  %vm1047_vm7 = vcmp.eq.f32.partialorder %v1046_v23, 8.507059e+37 }
 0xebe   :  { %v1080_v10 = vadd.f32 %v1758_v41, %v1079_v9 }
 0xec0   :  { %v1084_v13 = vsel %vm1083_vm1, %v1758_v41, %v1080_v10 }
 0xec1   :  { %v1762_v57 = vpop.eup %1761  ;;  %v1089_v17 = vsel %vm1086_vm2, %v1088_v15, %v1084_v13 }
 0xec2   :  { %v1038_v14 = vmul.f32 %v1762_v57, %v1036_v7  ;;  %vm1043_vm3 = vweird.f32 %v1762_v57  ;;  %v1092_v29 = vmul.f32 %v1089_v17, %v2206_v58  ;;  %v104_v58 = vld [vmem:[#allocation3 + $0x38] sm:$0xff] }
 0xec3   :  { %vm1044_vm6 = vmor %vm1042_vm5, %vm1043_vm3  ;;  %158 = vmatmul.f32.gmra.mxu0 %v104_v58 }
 0xec4   :  { %v1039_v19 = vsub.f32 1.0, %v1038_v14 }
 0xec6   :  { %v1040_v20 = vmul.f32 %v1762_v57, %v1039_v19 }
 0xec8   :  { %v1041_v21 = vadd.f32 %v1762_v57, %v1040_v20 }
 0xeca   :  { %v1045_v24 = vsel %vm1044_vm6, %v1762_v57, %v1041_v21 }
 0xecb   :  { %v1050_v27 = vsel %vm1047_vm7, %v1049_v25, %v1045_v24 }
 0xecc   :  { %v1053_v34 = vmul.f32 %v1050_v27, %v2210_v63 }
 0xef8   :  { %v1095_v16 = vpop.permute.xlu0 %1094 }
 0xef9   :  { %v1097_v18 = vmul.f32 %v1095_v16, %v1089_v17 }
 0xefb   :  { %1099 = vrot.lane.b32.xlu2 %v1097_v18, %s1954_s4 }
 0xf08   :  { %v1056_v26 = vpop.permute.xlu2 %1055 }
 0xf09   :  { %v1058_v28 = vmul.f32 %v1056_v26, %v1050_v27 }
 0xf0b   :  { %1060 = vrot.lane.b32.xlu1 %v1058_v28, %s1954_s4 }
 0xf40   :  { %v159_v42 = vpop.f32.mrf.mxu0 }
 0xf55   :  { %v1100_v30 = vpop.permute.xlu2 %1099 }
 0xf56   :  { %v2234_v31 = vadd.f32 %v1100_v30, %v1092_v29 }
 0xf58   :  { %1763 = vtanh.f32 %v2234_v31 }
 0xf5e   :  { %v1764_v32 = vpop.eup %1763 }
 0xf5f   :  { %1105 = vrot.lane.b32.xlu1 %v1764_v32, %s1953_s2  ;;  %v1352_v32 = vld [vmem:[#allocation9 + $0x38] sm:$0xff] }
 0xf60   :  { %1370 = vmatpush.msra.mxu3 %v1352_v32 }
 0xf7d   :  { %v1061_v35 = vpop.permute.xlu1 %1060 }
 0xf7e   :  { %v2239_v37 = vadd.f32 %v1061_v35, %v1053_v34  ;;  %v1351_v34 = vld [vmem:[#allocation9 + $0x30] sm:$0xff]  ;;  %v1350_v35 = vld [vmem:[#allocation9 + $0x28] sm:$0xff] }
 0xf7f   :  { %1371 = vmatpush.msra.mxu3 %v1351_v34 }
 0xf80   :  { %1765 = vtanh.f32 %v2239_v37 }
 0xf81   :  { %1372 = vmatpush.msra.mxu3 %v1350_v35 }
 0xf86   :  { %v1766_v44 = vpop.eup %1765 }
 0xf87   :  { %1066 = vrot.lane.b32.xlu0 %v1766_v44, %s1953_s2 }
 0xfd1   :  { %v1106_v53 = vpop.permute.xlu1 %1105 }
 0xfd2   :  { %v1108_v54 = vmul.f32 %v1106_v53, %v1089_v17  ;;  %v1348_v53 = vld [vmem:[#allocation9 + $0x18] sm:$0xff] }
 0xfd4   :  { %1110 = vrot.lane.b32.xlu2 %v1108_v54, %s1954_s4  ;;  %v1347_v54 = vld [vmem:[#allocation9 + $0x10] sm:$0xff] }
 0xff9   :  { %v1067_v56 = vpop.permute.xlu0 %1066 }
 0xffa   :  { %v1069_v33 = vmul.f32 %v1067_v56, %v1050_v27  ;;  %v1346_v56 = vld [vmem:[#allocation9 + $0x8] sm:$0xff] }
 0xffc   :  { %1155 = vrot.lane.b32.xlu0 %v1069_v33, %s1954_s4  ;;  %v1345_v33 = vld [vmem:[#allocation9] sm:$0xff] }
0x102e   :  { %v1111_v61 = vpop.permute.xlu2 %1110 }
0x102f   :  { %1633 = vmatmul.msk.f32.vlgmr.msra.gmra.mxu1 %vm225_vm4, %v1111_v61  ;;  %1634 = vmatmul.msk.f32.vlgmr.msrb.gmra.mxu2 %vm225_vm4, %v1111_v61 }
0x1030   :  { %1390 = vmatpush.msra.mxu1 %v1348_v53 }
0x1032   :  { %1391 = vmatpush.msra.mxu1 %v1347_v54 }
0x1034   :  { %1392 = vmatpush.msra.mxu1 %v1346_v56 }
0x1036   :  { %1393 = vmatpush.msra.mxu1 %v1345_v33 }
0x106e   :  { %v2247_v55 = vpop.permute.xlu0 %1155 }
0x106f   :  { %1635 = vmatmul.msk.f32.vlgmr.msrb.gmra.mxu3 %vm225_vm4, %v2247_v55 }
0x10ac   :  { %v1131_v63 = vpop.f32.mrf.mxu1 }
0x10ad   :  { %v1219_v0 = vadd.f32 %v1131_v63, %v159_v42 }
0x10af   :  { %1767 = vtanh.f32 %v1219_v0  ;;  %v1637_v3 = vmul.f32 -1.442695, %v1219_v0 }
0x10b2   :  { %v1151_v60 = vpop.f32.mrf.mxu2 }
0x10b5   :  { %v1768_v36 = vpop.eup %1767 }
0x10b6   :  { %1242 = vrot.lane.b32.xlu1 %v1768_v36, %s1953_s2 }
0x10f2   :  { %v1176_v43 = vpop.f32.mrf.mxu3 }
0x10f3   :  { %v1179_v1 = vadd.f32 %v1176_v43, %v1151_v60 }
0x10f5   :  { %v1180_v2 = vadd.f32 %v2252_v62, %v1179_v1 }
0x10f7   :  { %1769 = vtanh.f32 %v1180_v2  ;;  %v1636_v6 = vmul.f32 -1.442695, %v1180_v2 }
0x10f8   :  { %1771 = vpow2.f32 %v1637_v3 }
0x10fd   :  { %v1770_v59 = vpop.eup %1769 }
0x10fe   :  { %1203 = vrot.lane.b32.xlu2 %v1770_v59, %s1953_s2  ;;  %v1772_v38 = vpop.eup %1771 }
0x10ff   :  { %v1223_v45 = vadd.f32 1.0, %v1772_v38 }
0x1101   :  { %1773 = vrcp.f32 %v1223_v45  ;;  %v1235_v51 = vand.u32 2147483648, %v1223_v45  ;;  %vm1229_vm9 = vweird.f32 %v1223_v45  ;;  %v1233_v48 = vand.u32 2147483647, %v1223_v45 }
0x1102   :  { %1775 = vpow2.f32 %v1636_v6  ;;  %v1353_v6 = vld [vmem:[#allocation9 + $0x40] sm:$0xff] }
0x1103   :  { %v1236_v40 = vor.u32 1.1754944e-38, %v1235_v51  ;;  %vm1234_vm11 = vcmp.eq.f32.partialorder %v1233_v48, 8.507059e+37 }
0x1107   :  { %v1774_v49 = vpop.eup %1773 }
0x1108   :  { %v1225_v46 = vmul.f32 %v1774_v49, %v1223_v45  ;;  %vm1230_vm8 = vweird.f32 %v1774_v49  ;;  %v1776_v7 = vpop.eup %1775 }
0x1109   :  { %vm1231_vm10 = vmor %vm1229_vm9, %vm1230_vm8  ;;  %v1184_v8 = vadd.f32 1.0, %v1776_v7 }
0x110a   :  { %v1226_v50 = vsub.f32 1.0, %v1225_v46 }
0x110b   :  { %1777 = vrcp.f32 %v1184_v8  ;;  %v1196_v13 = vand.u32 2147483648, %v1184_v8  ;;  %vm1190_vm13 = vweird.f32 %v1184_v8  ;;  %v1194_v14 = vand.u32 2147483647, %v1184_v8 }
0x110c   :  { %v1227_v39 = vmul.f32 %v1774_v49, %v1226_v50 }
0x110d   :  { %v1197_v16 = vor.u32 1.1754944e-38, %v1196_v13  ;;  %vm1195_vm15 = vcmp.eq.f32.partialorder %v1194_v14, 8.507059e+37  ;;  %v1497_v13 = vld [vmem:[#allocation9 + $0x140] sm:$0xff]  ;;  %v1482_v14 = vld [vmem:[#allocation9 + $0xc8] sm:$0xff] }
0x110e   :  { %v1228_v47 = vadd.f32 %v1774_v49, %v1227_v39 }
0x1110   :  { %v1232_v52 = vsel %vm1231_vm10, %v1774_v49, %v1228_v47 }
0x1111   :  { %v1237_v41 = vsel %vm1234_vm11, %v1236_v40, %v1232_v52  ;;  %v1778_v9 = vpop.eup %1777 }
0x1112   :  { %v1186_v10 = vmul.f32 %v1778_v9, %v1184_v8  ;;  %vm1191_vm12 = vweird.f32 %v1778_v9  ;;  %v1240_v20 = vmul.f32 %v1237_v41, %v2234_v31 }
0x1113   :  { %vm1192_vm14 = vmor %vm1190_vm13, %vm1191_vm12 }
0x1114   :  { %v1187_v57 = vsub.f32 1.0, %v1186_v10  ;;  %v1499_v10 = vld [vmem:[#allocation9 + $0x150] sm:$0xff] }
0x1116   :  { %v1188_v11 = vmul.f32 %v1778_v9, %v1187_v57  ;;  %v1498_v57 = vld [vmem:[#allocation9 + $0x148] sm:$0xff] }
0x1118   :  { %v1189_v12 = vadd.f32 %v1778_v9, %v1188_v11  ;;  %v1484_v11 = vld [vmem:[#allocation9 + $0xd8] sm:$0xff] }
0x111a   :  { %v1193_v15 = vsel %vm1192_vm14, %v1778_v9, %v1189_v12  ;;  %v1500_v9 = vld [vmem:[#allocation9 + $0x158] sm:$0xff]  ;;  %v1483_v12 = vld [vmem:[#allocation9 + $0xd0] sm:$0xff] }
0x111b   :  { %v1198_v18 = vsel %vm1195_vm15, %v1197_v16, %v1193_v15  ;;  %1502 = vmatpush.msrb.mxu0 %v1500_v9  ;;  %v1496_v15 = vld [vmem:[#allocation9 + $0x138] sm:$0xff]  ;;  %v1481_v16 = vld [vmem:[#allocation9 + $0xc0] sm:$0xff] }
0x111c   :  { %v1201_v24 = vmul.f32 %v1198_v18, %v2239_v37  ;;  %v1349_v37 = vld [vmem:[#allocation9 + $0x20] sm:$0xff] }
0x111d   :  { %1373 = vmatpush.msra.mxu3 %v1349_v37  ;;  %1503 = vmatpush.msrb.mxu0 %v1499_v10 }
0x111f   :  { %1439 = vmatpush.msrb.mxu3 %v1352_v32  ;;  %1504 = vmatpush.msrb.mxu0 %v1498_v57  ;;  %v1473_v32 = vld [vmem:[#allocation9 + $0x80] sm:$0xff] }
0x1121   :  { %1440 = vmatpush.msrb.mxu3 %v1351_v34  ;;  %1505 = vmatpush.msrb.mxu0 %v1497_v13 }
0x1123   :  { %1441 = vmatpush.msrb.mxu3 %v1350_v35  ;;  %1506 = vmatpush.msrb.mxu0 %v1496_v15  ;;  %v1472_v35 = vld [vmem:[#allocation9 + $0x78] sm:$0xff] }
0x1125   :  { %1442 = vmatpush.msrb.mxu3 %v1349_v37  ;;  %v1487_v37 = vld [vmem:[#allocation9 + $0xf0] sm:$0xff] }
0x1128   :  { %v1243_v4 = vpop.permute.xlu1 %1242 }
0x1129   :  { %v1245_v5 = vmul.f32 %v1243_v4, %v1237_v41  ;;  %v1356_v4 = vld [vmem:[#allocation9 + $0x58] sm:$0xff] }
0x112a   :  { %1415 = vmatpush.msrb.mxu2 %v1356_v4  ;;  %v1548_v4 = vld [vmem:[#allocation9 + $0x178] sm:$0xff] }
0x112b   :  { %1247 = vrot.lane.b32.xlu0 %v1245_v5, %s1954_s4  ;;  %v1354_v5 = vld [vmem:[#allocation9 + $0x48] sm:$0xff] }
0x1158   :  { %v1204_v17 = vpop.permute.xlu2 %1203 }
0x1159   :  { %v1206_v19 = vmul.f32 %v1204_v17, %v1198_v18  ;;  %v1495_v17 = vld [vmem:[#allocation9 + $0x130] sm:$0xff] }
0x115a   :  { %1507 = vmatpush.msrb.mxu0 %v1495_v17 }
0x115b   :  { %1208 = vrot.lane.b32.xlu1 %v1206_v19, %s1954_s4  ;;  %v1494_v19 = vld [vmem:[#allocation9 + $0x128] sm:$0xff] }
0x115c   :  { %1508 = vmatpush.msrb.mxu0 %v1494_v19 }
0x119d   :  { %v1248_v21 = vpop.permute.xlu0 %1247 }
0x119e   :  { %v1250_v22 = vadd.f32 %v1248_v21, %v1240_v20  ;;  %v1479_v20 = vld [vmem:[#allocation9 + $0xb0] sm:$0xff]  ;;  %v1493_v21 = vld [vmem:[#allocation9 + $0x120] sm:$0xff] }
0x119f   :  { %1509 = vmatpush.msrb.mxu0 %v1493_v21 }
0x11a0   :  { %1779 = vtanh.f32 %v1250_v22  ;;  %v1478_v22 = vld [vmem:[#allocation9 + $0xa8] sm:$0xff] }
0x11a6   :  { %v1780_v23 = vpop.eup %1779 }
0x11a7   :  { %1253 = vrot.lane.b32.xlu2 %v1780_v23, %s1953_s2  ;;  %v1492_v23 = vld [vmem:[#allocation9 + $0x118] sm:$0xff] }
0x11a8   :  { %1510 = vmatpush.msrb.mxu0 %v1492_v23 }
0x11cd   :  { %v1209_v25 = vpop.permute.xlu1 %1208 }
0x11ce   :  { %v2261_v26 = vadd.f32 %v1209_v25, %v1201_v24  ;;  %v1477_v24 = vld [vmem:[#allocation9 + $0xa0] sm:$0xff]  ;;  %v1491_v25 = vld [vmem:[#allocation9 + $0x110] sm:$0xff] }
0x11cf   :  { %1511 = vmatpush.msrb.mxu0 %v1491_v25 }
0x11d0   :  { %1781 = vtanh.f32 %v2261_v26 }
0x11d6   :  { %v1782_v27 = vpop.eup %1781 }
0x11d7   :  { %1214 = vrot.lane.b32.xlu0 %v1782_v27, %s1953_s2  ;;  %v1490_v27 = vld [vmem:[#allocation9 + $0x108] sm:$0xff] }
0x11d8   :  { %1512 = vmatpush.msrb.mxu0 %v1490_v27 }
0x1201   :  { %v1254_v28 = vpop.permute.xlu2 %1253 }
0x1202   :  { %v1256_v29 = vmul.f32 %v1254_v28, %v1237_v41  ;;  %v1355_v41 = vld [vmem:[#allocation9 + $0x50] sm:$0xff] }
0x1203   :  { %1416 = vmatpush.msrb.mxu2 %v1355_v41  ;;  %v1475_v28 = vld [vmem:[#allocation9 + $0x90] sm:$0xff] }
0x1204   :  { %1283 = vrot.lane.b32.xlu1 %v1256_v29, %s1954_s4  ;;  %v1489_v29 = vld [vmem:[#allocation9 + $0x100] sm:$0xff]  ;;  %v1547_v41 = vld [vmem:[#allocation9 + $0x170] sm:$0xff] }
0x1205   :  { %1417 = vmatpush.msrb.mxu2 %v1354_v5  ;;  %1513 = vmatpush.msrb.mxu0 %v1489_v29  ;;  %v1546_v5 = vld [vmem:[#allocation9 + $0x168] sm:$0xff] }
0x1207   :  { %1418 = vmatpush.msrb.mxu2 %v1353_v6  ;;  %v1545_v6 = vld [vmem:[#allocation9 + $0x160] sm:$0xff] }
0x1249   :  { %v1215_v30 = vpop.permute.xlu0 %1214 }
0x124a   :  { %v1217_v31 = vmul.f32 %v1215_v30, %v1198_v18  ;;  %v1480_v18 = vld [vmem:[#allocation9 + $0xb8] sm:$0xff]  ;;  %v1474_v30 = vld [vmem:[#allocation9 + $0x88] sm:$0xff] }
0x124c   :  { %1258 = vrot.lane.b32.xlu2 %v1217_v31, %s1954_s4  ;;  %v1488_v31 = vld [vmem:[#allocation9 + $0xf8] sm:$0xff] }
0x124d   :  { %1514 = vmatpush.msrb.mxu0 %v1488_v31 }
0x124f   :  { %1515 = vmatpush.msrb.mxu0 %v1487_v37 }
0x1276   :  { %v1284_v44 = vpop.permute.xlu1 %1283 }
0x1277   :  { %1639 = vmatmul.msk.f32.vlgmr.msra.gmra.mxu2 %vm225_vm4, %v1284_v44  ;;  %v1471_v44 = vld [vmem:[#allocation9 + $0x70] sm:$0xff] }
0x1278   :  { %1522 = vmatpush.msra.mxu2 %v1484_v11 }
0x127a   :  { %1523 = vmatpush.msra.mxu2 %v1483_v12  ;;  %v1662_v12 = vld [vmem:[#allocation11 + $0x3] ss:$0 sm:$0xff] }
0x127c   :  { %1524 = vmatpush.msra.mxu2 %v1482_v14 }
0x127e   :  { %1525 = vmatpush.msra.mxu2 %v1481_v16 }
0x1280   :  { %1526 = vmatpush.msra.mxu2 %v1480_v18 }
0x1282   :  { %1527 = vmatpush.msra.mxu2 %v1479_v20 }
0x1284   :  { %1528 = vmatpush.msra.mxu2 %v1478_v22 }
0x1286   :  { %1529 = vmatpush.msra.mxu2 %v1477_v24 }
0x12a6   :  { %v1259_v58 = vpop.permute.xlu2 %1258 }
0x12a7   :  { %1638 = vmatmul.msk.f32.vlgmr.msrb.gmra.mxu1 %vm225_vm4, %v1259_v58  ;;  %1641 = vmatmul.msk.f32.vlgmr.msra.gmra.mxu3 %vm225_vm4, %v1259_v58 }
0x12a8   :  { %1459 = vmatpush.msrb.mxu1 %v1348_v53  ;;  %v1486_v53 = vld [vmem:[#allocation9 + $0xe8] sm:$0xff] }
0x12a9   :  { %1516 = vmatpush.msrb.mxu0 %v1486_v53 }
0x12aa   :  { %1460 = vmatpush.msrb.mxu1 %v1347_v54  ;;  %v1470_v54 = vld [vmem:[#allocation9 + $0x68] sm:$0xff] }
0x12ac   :  { %1461 = vmatpush.msrb.mxu1 %v1346_v56  ;;  %v1485_v56 = vld [vmem:[#allocation9 + $0xe0] sm:$0xff] }
0x12ad   :  { %1517 = vmatpush.msrb.mxu0 %v1485_v56 }
0x12ae   :  { %1462 = vmatpush.msrb.mxu1 %v1345_v33  ;;  %v1469_v33 = vld [vmem:[#allocation9 + $0x60] sm:$0xff] }
0x12af   :  { %1642 = vmatmul.msk.f32.vlgmr.msra.gmra.mxu1 %vm225_vm4, %v2247_v55 }
0x12b7   :  { %1645 = vmatmul.msk.f32.vlgmr.msrb.gmra.mxu1 %vm225_vm4, %v1259_v58  ;;  %v1560_v58 = vld [vmem:[#allocation9 + $0x1d8] sm:$0xff] }
0x12b8   :  { %1563 = vmatpush.msra.mxu3 %v1560_v58 }
0x12fa   :  { %v1304_v61 = vpop.f32.mrf.mxu2 }
0x1324   :  { %v1279_v42 = vpop.f32.mrf.mxu1 }
0x1325   :  { %v1305_v63 = vadd.f32 %v1304_v61, %v1279_v42  ;;  %v1559_v61 = vld [vmem:[#allocation9 + $0x1d0] sm:$0xff]  ;;  %v1558_v42 = vld [vmem:[#allocation9 + $0x1c8] sm:$0xff] }
0x1326   :  { %1564 = vmatpush.msra.mxu3 %v1559_v61 }
0x1327   :  { %v1307_v0 = vadd.f32 %v2252_v62, %v1305_v63  ;;  %v1557_v63 = vld [vmem:[#allocation9 + $0x1c0] sm:$0xff] }
0x1328   :  { %1565 = vmatpush.msra.mxu3 %v1558_v42 }
0x1329   :  { %1783 = vtanh.f32 %v1307_v0  ;;  %v1640_v60 = vmul.f32 -1.442695, %v1307_v0  ;;  %v1556_v0 = vld [vmem:[#allocation9 + $0x1b8] sm:$0xff] }
0x132a   :  { %1566 = vmatpush.msra.mxu3 %v1557_v63 }
0x132b   :  { %1785 = vpow2.f32 %v1640_v60  ;;  %v1554_v60 = vld [vmem:[#allocation9 + $0x1a8] sm:$0xff] }
0x132c   :  { %1567 = vmatpush.msra.mxu3 %v1556_v0 }
0x132f   :  { %v1784_v36 = vpop.eup %1783 }
0x1330   :  { %1330 = vrot.lane.b32.xlu0 %v1784_v36, %s1953_s2  ;;  %v1555_v36 = vld [vmem:[#allocation9 + $0x1b0] sm:$0xff] }
0x1331   :  { %v1786_v43 = vpop.eup %1785  ;;  %1568 = vmatpush.msra.mxu3 %v1555_v36 }
0x1332   :  { %v1311_v1 = vadd.f32 1.0, %v1786_v43  ;;  %v1553_v43 = vld [vmem:[#allocation9 + $0x1a0] sm:$0xff] }
0x1333   :  { %1569 = vmatpush.msra.mxu3 %v1554_v60 }
0x1334   :  { %1787 = vrcp.f32 %v1311_v1  ;;  %v1323_v45 = vand.u32 2147483648, %v1311_v1  ;;  %vm1317_vm1 = vweird.f32 %v1311_v1  ;;  %v1321_v49 = vand.u32 2147483647, %v1311_v1 }
0x1335   :  { %1570 = vmatpush.msra.mxu3 %v1553_v43 }
0x1336   :  { %v1324_v46 = vor.u32 1.1754944e-38, %v1323_v45  ;;  %vm1322_vm3 = vcmp.eq.f32.partialorder %v1321_v49, 8.507059e+37 }
0x133a   :  { %v1788_v2 = vpop.eup %1787 }
0x133b   :  { %v1313_v3 = vmul.f32 %v1788_v2, %v1311_v1  ;;  %vm1318_vm0 = vweird.f32 %v1788_v2  ;;  %v1395_v1 = vpop.f32.mrf.mxu1 }
0x133c   :  { %vm1319_vm2 = vmor %vm1317_vm1, %vm1318_vm0 }
0x133d   :  { %v1314_v59 = vsub.f32 1.0, %v1313_v3  ;;  %v1375_v3 = vpop.f32.mrf.mxu3 }
0x133f   :  { %v1315_v55 = vmul.f32 %v1788_v2, %v1314_v59  ;;  %v1396_v59 = vadd.f32 %v1395_v1, %v1375_v3 }
0x1341   :  { %v1316_v38 = vadd.f32 %v1788_v2, %v1315_v55 }
0x1343   :  { %v1320_v62 = vsel %vm1319_vm2, %v1788_v2, %v1316_v38  ;;  %v1552_v2 = vld [vmem:[#allocation9 + $0x198] sm:$0xff]  ;;  %v1464_v55 = vpop.f32.mrf.mxu1  ;;  %v1660_v38 = vld [vmem:[#allocation11 + $0x1] ss:$0 sm:$0xff] }
0x1344   :  { %v1325_v39 = vsel %vm1322_vm3, %v1324_v46, %v1320_v62  ;;  %1571 = vmatpush.msra.mxu3 %v1552_v2 }
0x1345   :  { %v1328_v51 = vmul.f32 %v1325_v39, %v2261_v26  ;;  %v1476_v26 = vld [vmem:[#allocation9 + $0x98] sm:$0xff] }
0x1346   :  { %1530 = vmatpush.msra.mxu2 %v1476_v26 }
0x1348   :  { %1531 = vmatpush.msra.mxu2 %v1475_v28 }
0x134a   :  { %1532 = vmatpush.msra.mxu2 %v1474_v30 }
0x134c   :  { %1533 = vmatpush.msra.mxu2 %v1473_v32 }
0x134e   :  { %1534 = vmatpush.msra.mxu2 %v1472_v35 }
0x1350   :  { %1535 = vmatpush.msra.mxu2 %v1471_v44 }
0x1352   :  { %1536 = vmatpush.msra.mxu2 %v1470_v54 }
0x1354   :  { %1537 = vmatpush.msra.mxu2 %v1469_v33 }
0x13a2   :  { %v1331_v50 = vpop.permute.xlu0 %1330 }
0x13a3   :  { %v1333_v47 = vmul.f32 %v1331_v50, %v1325_v39 }
0x13a5   :  { %1335 = vrot.lane.b32.xlu1 %v1333_v47, %s1954_s4 }
0x1417   :  { %v1336_v48 = vpop.permute.xlu1 %1335 }
0x1418   :  { %v1338_v52 = vadd.f32 %v1336_v48, %v1328_v51  ;;  %v1551_v48 = vld [vmem:[#allocation9 + $0x190] sm:$0xff] }
0x1419   :  { %1572 = vmatpush.msra.mxu3 %v1551_v48 }
0x141a   :  { %1789 = vtanh.f32 %v1338_v52  ;;  %v1550_v52 = vld [vmem:[#allocation9 + $0x188] sm:$0xff] }
0x141b   :  { %1573 = vmatpush.msra.mxu3 %v1550_v52 }
0x1420   :  { %v1790_v40 = vpop.eup %1789 }
0x1421   :  { %1341 = vrot.lane.b32.xlu2 %v1790_v40, %s1953_s2  ;;  %v1549_v40 = vld [vmem:[#allocation9 + $0x180] sm:$0xff] }
0x1422   :  { %1574 = vmatpush.msra.mxu3 %v1549_v40 }
0x1424   :  { %1575 = vmatpush.msra.mxu3 %v1548_v4 }
0x1426   :  { %1576 = vmatpush.msra.mxu3 %v1547_v41 }
0x1428   :  { %1577 = vmatpush.msra.mxu3 %v1546_v5 }
0x142a   :  { %1578 = vmatpush.msra.mxu3 %v1545_v6 }
0x147b   :  { %v1342_v7 = vpop.permute.xlu2 %1341 }
0x147c   :  { %v1344_v8 = vmul.f32 %v1342_v7, %v1325_v39  ;;  %v1661_v7 = vld [vmem:[#allocation11 + $0x2] ss:$0 sm:$0xff] }
0x147e   :  { %1399 = vrot.lane.b32.xlu0 %v1344_v8, %s1954_s4 }
0x14f0   :  { %v1400_v34 = vpop.permute.xlu0 %1399 }
0x14f1   :  { %1643 = vmatmul.msk.f32.vlgmr.msrb.gmra.mxu2 %vm225_vm4, %v1400_v34  ;;  %1644 = vmatmul.msk.f32.vlgmr.msrb.gmra.mxu3 %vm225_vm4, %v1400_v34 }
0x1574   :  { %v1420_v45 = vpop.f32.mrf.mxu2  ;;  %v1444_v49 = vpop.f32.mrf.mxu3 }
0x1575   :  { %v1423_v62 = vadd.f32 %v1420_v45, %v1396_v59  ;;  %v1465_v46 = vadd.f32 %v1464_v55, %v1444_v49 }
0x1577   :  { %v1425_v50 = vadd.f32 %v1660_v38, %v1423_v62  ;;  %v1467_v39 = vadd.f32 %v1660_v38, %v1465_v46 }
0x1579   :  { %v1426_v47 = vmax.f32 %v1425_v50, 0.0  ;;  %v1468_v51 = vmax.f32 %v1467_v39, 0.0 }
0x157b   :  { %1518 = vmatmul.f32.vlgmr.msrb.gmra.mxu0 %v1468_v51  ;;  %1538 = vmatmul.f32.vlgmr.msra.gmra.mxu2 %v1426_v47 }
0x15f8   :  { %v1519_v8 = vpop.f32.mrf.mxu0 }
0x15fe   :  { %v1539_v9 = vpop.f32.mrf.mxu2 }
0x15ff   :  { %v1540_v10 = vadd.f32 %v1539_v9, %v1519_v8 }
0x1601   :  { %v1543_v57 = vadd.f32 %v1661_v7, %v1540_v10 }
0x1603   :  { %v1544_v11 = vmax.f32 %v1543_v57, 0.0 }
0x1605   :  { %1579 = vmatmul.f32.vlgmr.msra.gmra.mxu3 %v1544_v11 }
0x1688   :  { %v1580_v13 = vpop.f32.mrf.mxu3 }
0x1689   :  { %v1581_v14 = vadd.f32 %v1662_v12, %v1580_v13 }
0x168b   :  { %1583 = vst [vmem:[#allocation12] sm:$0xff] %v1581_v14 }
0x168c   :  { %1594 = dma.vmem_to_hbm [thread:$0]  %s1590_s20, 128, %s1592_s23, [#allocation5]  }
0x168d   :  { %1942 = dma.done.wait [#allocation5], 128  }
0x168e   :  { %1943 = vsyncadd [#allocation5], 4294967168 }
0x168f   :  { %1599 = vsyncpa [#allocation4], 1 }
0x1690   :  { %1600 = vsyncpa [#allocation7], 1 }
0x1691   :  { %1601 = vsyncpa [#allocation10], 1 }
0x1692   :  { %1602 = vsyncpa [#allocation5], 1 }

</bundles_post_ra>
